<compile_context>
chip_gen: v6e
topology: v6e:2x2x1
jax: 0.10.0
libtpu: 0.0.40
codegen_flags: <defaults>
</compile_context>

<pallas_src>
import math

import jax
import jax.numpy as jnp
from jax.experimental import pallas as pl
from jax.experimental.pallas import tpu as pltpu

PATCH = 4      # patch size P of the synthetic encoder
C_LAT = 8      # latent channels C produced by the encoder
D_PAD = 128    # lane-dense padded token width (real token width is C_LAT + 3)


# ---------------------------------------------------------------------------
# Positional encoding (mirrors make_positional_encoding in PyTorch)
# ---------------------------------------------------------------------------
def make_positional_encoding(T, H, W):
    t_coord = jnp.linspace(0.0, 1.0, T)
    row_coord = jnp.linspace(0.0, 1.0, H)
    col_coord = jnp.linspace(0.0, 1.0, W)
    time_enc = jnp.broadcast_to(t_coord.reshape(T, 1, 1), (T, H, W))
    row_enc = jnp.broadcast_to(row_coord.reshape(1, H, 1), (T, H, W))
    col_enc = jnp.broadcast_to(col_coord.reshape(1, 1, W), (T, H, W))
    return jnp.stack([time_enc, row_enc, col_enc], axis=-1)       # (T, H, W, 3)


# ---------------------------------------------------------------------------
# Parameters (unpadded reference params)
# ---------------------------------------------------------------------------
def init_params(key, H, W):
    P = PATCH
    patch_dim = P * P
    d_tok = C_LAT + 3
    dec_in_dim = (H // P) * (W // P) * C_LAT
    dec_out_dim = H * W
    ks = jax.random.split(key, 8)
    scale = 0.05
    return dict(
        w_enc=scale * jax.random.normal(ks[0], (patch_dim, C_LAT), jnp.float32),
        b_enc=scale * jax.random.normal(ks[1], (1, C_LAT), jnp.float32),
        wq=scale * jax.random.normal(ks[2], (d_tok, d_tok), jnp.float32),
        wk=scale * jax.random.normal(ks[3], (d_tok, d_tok), jnp.float32),
        wv=scale * jax.random.normal(ks[4], (d_tok, d_tok), jnp.float32),
        wo=scale * jax.random.normal(ks[5], (d_tok, d_tok), jnp.float32),
        bo=scale * jax.random.normal(ks[6], (1, d_tok), jnp.float32),
        w_dec=scale * jax.random.normal(ks[7], (dec_in_dim, dec_out_dim), jnp.float32),
        b_dec=jnp.zeros((1, dec_out_dim), jnp.float32),
    )


def pack_params(params, T, H, W):
    """Host-side folds: encoder->QKV, scale->wq, wo/bo->decoder, bf16 weights."""
    P = PATCH
    Hp, Wp = H // P, W // P
    C = C_LAT
    d_tok = C + 3
    off = d_tok - C                      # tokens are cat([pos(0:3), enc(3:3+C)])
    S = T * Hp * Wp
    HW = H * W
    HpWp = Hp * Wp
    D = D_PAD

    # Padded encoder weight/bias (latent lanes at [off, off+C)), pos lanes [0:3).
    wenc = jnp.zeros((P * P, D), jnp.float32).at[:, off:off + C].set(params["w_enc"])
    benc = jnp.zeros((1, D), jnp.float32).at[:, off:off + C].set(params["b_enc"])
    pos = make_positional_encoding(T, Hp, Wp).reshape(S, 3)
    posb = jnp.zeros((S, D), jnp.float32).at[:, :3].set(pos) + benc

    def pad_sq(w):
        return jnp.zeros((D, D), jnp.float32).at[:d_tok, :d_tok].set(w)

    # Attention scale folded into the q block of the fused QKV weight.
    scale = 1.0 / math.sqrt(d_tok)
    wqkv = jnp.concatenate(
        [pad_sq(params["wq"]) * scale, pad_sq(params["wk"]), pad_sq(params["wv"])],
        axis=1)                                                   # (D, 3D)

    # Encoder folded into the QKV projection (contraction PP=16 instead of 128).
    wenc_qkv = (wenc @ wqkv).astype(jnp.bfloat16)                 # (PP, 3D) bf16
    posb_qkv = posb @ wqkv                                        # (S, 3D)  f32

    # Output projection + latent-channel selection + decoder folded into one
    # flat weight: dec = o.reshape(T, HpWp*D) @ wod + bdec_eff.
    wo = pad_sq(params["wo"])
    bo = jnp.zeros((1, D), jnp.float32).at[:, :d_tok].set(params["bo"])
    wdec_pad = jnp.zeros((HpWp, D, HW), jnp.float32).at[:, off:off + C, :].set(
        params["w_dec"].reshape(HpWp, C, HW))
    wod = jnp.einsum("de,pef->pdf", wo, wdec_pad).reshape(HpWp * D, HW)
    wod = wod.astype(jnp.bfloat16)                                # (HpWp*D, HW) bf16
    bdec_eff = params["b_dec"] + jnp.einsum("od,pdf->of", bo, wdec_pad)  # (1, HW) f32

    return dict(posb_qkv=posb_qkv, wenc_qkv=wenc_qkv, wod=wod, bdec_eff=bdec_eff)


# ---------------------------------------------------------------------------
# Fused kernel: (encoder+QKV) + causal attention + (wo+decoder) matmul
# ---------------------------------------------------------------------------
def _make_fused_kernel(T, HpWp, S):
    D = D_PAD

    def kernel(patches_ref, posbqkv_ref, wencqkv_ref, wod_ref, bdec_ref,
               out_ref, owide_ref):
        hw_idx = pl.program_id(1)

        # Attention is computed once per batch element (hw tile 0) and cached
        # in VMEM scratch for the remaining decoder HW tiles.
        @pl.when(hw_idx == 0)
        def _():
            # Fused encoder + QKV projection (bf16 MXU operands, f32 acc).
            qkv = jnp.dot(patches_ref[0], wencqkv_ref[...],
                          preferred_element_type=jnp.float32) + posbqkv_ref[...]
            q = qkv[:, :D]
            k = qkv[:, D:2 * D]
            v = qkv[:, 2 * D:]

            # Causal attention; 1/sqrt(d_tok) is pre-folded into the q block.
            scores = jnp.dot(q, k.T, preferred_element_type=jnp.float32)
            row = jax.lax.broadcasted_iota(jnp.int32, (S, S), 0)
            col = jax.lax.broadcasted_iota(jnp.int32, (S, S), 1)
            scores = jnp.where(col <= row, scores, jnp.float32(-1e30))
            m = jnp.max(scores, axis=-1, keepdims=True)
            p = jnp.exp(scores - m)
            l = jnp.sum(p, axis=-1, keepdims=True)
            attn = p * pl.reciprocal(l, approx=True)      # EUP-slot reciprocal

            o = jnp.dot(attn.astype(jnp.bfloat16), v.astype(jnp.bfloat16),
                        preferred_element_type=jnp.float32)        # (S, D) f32

            # Rows of a timestep are contiguous: (T*HpWp, D) -> (T, HpWp*D).
            owide_ref[...] = o.reshape(T, HpWp * D).astype(jnp.bfloat16)

        # Fused (wo + channel-select + decoder) matmul on the current HW tile.
        dec = jnp.dot(owide_ref[...], wod_ref[...],
                      preferred_element_type=jnp.float32) + bdec_ref[...]
        out_ref[0] = dec

    return kernel


# ---------------------------------------------------------------------------
# Pipeline forward (one fused pallas_call, grid over (batch, HW tiles))
# ---------------------------------------------------------------------------
def causal_ms_step_forward(last_frame, packed):
    B, T, H, W = last_frame.shape
    P = PATCH
    Hp, Wp = H // P, W // P
    HpWp = Hp * Wp
    S = T * HpWp
    PP = P * P
    HW = H * W

    # TODO(synk): patchify stays in XLA; fold into the kernel once W >= 128.
    patches = (
        last_frame.reshape(B, T, Hp, P, Wp, P)
        .transpose(0, 1, 2, 4, 3, 5)
        .reshape(B, S, PP)
        .astype(jnp.bfloat16)
    )

    # Decoder output tile (multiple of 128 dividing HW) -> caps wod residency.
    hw_tile = HW
    for cand in (2048, 1024, 512, 256, 128):
        if HW % cand == 0:
            hw_tile = cand
            break
    n_hw = HW // hw_tile

    # Generation-aware VMEM limit (32 MiB class on v7x, up to 64 MiB on v5e/v6e).
    try:
        info = pltpu.get_tpu_info()
        vmem_cap = int(getattr(info, "vmem_capacity_bytes", 128 * 1024 * 1024))
    except Exception:
        vmem_cap = 128 * 1024 * 1024
    vmem_limit = int(min(64 * 1024 * 1024, max(32 * 1024 * 1024, vmem_cap // 2)))

    kernel = _make_fused_kernel(T, HpWp, S)

    flops = B * (
        2 * S * PP * 3 * D_PAD            # fused encoder + QKV
        + 2 * S * S * D_PAD               # q @ k^T
        + 2 * S * S * D_PAD               # attn @ v
        + 2 * T * (HpWp * D_PAD) * HW     # fused wo + decoder matmul
    )
    bytes_accessed = (
        2 * B * S * PP                    # patches (bf16)
        + 4 * S * 3 * D_PAD               # posb_qkv (f32)
        + 2 * PP * 3 * D_PAD              # wenc_qkv (bf16)
        + 2 * HpWp * D_PAD * HW           # wod (bf16)
        + 4 * HW                          # bdec_eff (f32)
        + 4 * B * T * HW                  # output (f32)
    )

    dec_out = pl.pallas_call(
        kernel,
        out_shape=jax.ShapeDtypeStruct((B, T, HW), jnp.float32),
        grid=(B, n_hw),
        in_specs=[
            pl.BlockSpec((1, S, PP), lambda b, h: (b, 0, 0)),            # patches
            pl.BlockSpec((S, 3 * D_PAD), lambda b, h: (0, 0)),           # posb_qkv
            pl.BlockSpec((PP, 3 * D_PAD), lambda b, h: (0, 0)),          # wenc_qkv
            pl.BlockSpec((HpWp * D_PAD, hw_tile), lambda b, h: (0, h)),  # wod tile
            pl.BlockSpec((1, hw_tile), lambda b, h: (0, h)),             # bdec tile
        ],
        out_specs=pl.BlockSpec((1, T, hw_tile), lambda b, h: (b, 0, h)),
        scratch_shapes=[pltpu.VMEM((T, HpWp * D_PAD), jnp.bfloat16)],
        compiler_params=pltpu.CompilerParams(
            dimension_semantics=("parallel", "arbitrary"),
            vmem_limit_bytes=vmem_limit,
        ),
        cost_estimate=pl.CostEstimate(
            flops=flops, transcendentals=B * S * S,
            bytes_accessed=bytes_accessed),
    )(patches, packed["posb_qkv"], packed["wenc_qkv"], packed["wod"],
      packed["bdec_eff"])

    return dec_out.reshape(B, T, H, W)              # reshape_as(last_frame)


# ---------------------------------------------------------------------------
# Pure-JAX reference of the same synthetic pipeline (for a tolerance check)
# ---------------------------------------------------------------------------
def reference_forward(last_frame, params):
    B, T, H, W = last_frame.shape
    P = PATCH
    Hp, Wp = H // P, W // P
    C = C_LAT
    d_tok = C + 3
    S = T * Hp * Wp

    patches = (last_frame.reshape(B, T, Hp, P, Wp, P)
               .transpose(0, 1, 2, 4, 3, 5).reshape(B, S, P * P))
    enc = patches @ params["w_enc"] + params["b_enc"]
    pos = make_positional_encoding(T, Hp, Wp).reshape(S, 3)
    tokens = jnp.concatenate([jnp.broadcast_to(pos[None], (B, S, 3)), enc], axis=-1)

    q = tokens @ params["wq"]
    k = tokens @ params["wk"]
    v = tokens @ params["wv"]
    scores = jnp.einsum("bsd,btd->bst", q, k) / math.sqrt(d_tok)
    mask = jnp.tril(jnp.ones((S, S), dtype=bool))
    scores = jnp.where(mask[None], scores, -jnp.inf)
    attn = jax.nn.softmax(scores, axis=-1)
    o = jnp.einsum("bst,btd->bsd", attn, v)
    out = o @ params["wo"] + params["bo"]

    preds = out[..., -C:]
    dec_in = preds.reshape(B, T, Hp * Wp * C)
    dec = dec_in @ params["w_dec"] + params["b_dec"]
    return dec.reshape(B, T, H, W)


# ---------------------------------------------------------------------------
if __name__ == "__main__":
    B, T, H, W = 2, 2, 16, 16
    key = jax.random.PRNGKey(0)
    k_in, k_par = jax.random.split(key)

    last_frame = jax.random.normal(k_in, (B, T, H, W), jnp.float32)
    params = init_params(k_par, H, W)
    packed = pack_params(params, T, H, W)

    forward = jax.jit(causal_ms_step_forward)
    out = jax.block_until_ready(forward(last_frame, packed))

    assert out.shape == last_frame.shape, (out.shape, last_frame.shape)
    assert bool(jnp.all(jnp.isfinite(out)))

    # Loose tolerance: kernel uses bf16 MXU operands + approx softmax reciprocal.
    ref = reference_forward(last_frame, params)
    max_err = float(jnp.max(jnp.abs(out - ref)))
    assert max_err < 2e-2, f"max abs err vs reference: {max_err}"

    print("KERNEL_OK")
</pallas_src>

<mosaic_0001>
module attributes {stable_mosaic.version = 11 : i64} {
  func.func @kernel(%arg0: i32, %arg1: i32, %arg2: memref<1x32x16xbf16, #tpu.memory_space<vmem>>, %arg3: memref<32x384xf32, #tpu.memory_space<vmem>>, %arg4: memref<16x384xbf16, #tpu.memory_space<vmem>>, %arg5: memref<2048x256xbf16, #tpu.memory_space<vmem>>, %arg6: memref<1x256xf32, #tpu.memory_space<vmem>>, %arg7: memref<1x2x256xf32, #tpu.memory_space<vmem>>, %arg8: memref<2x2048xbf16, #tpu.memory_space<vmem>>) attributes {dimension_semantics = [#tpu.dimension_semantics<parallel>, #tpu.dimension_semantics<arbitrary>], iteration_bounds = array<i64: 2, 1>, scalar_prefetch = 0 : i64, scratch_operands = 1 : i64, tpu.core_type = #tpu.core_type<tc>, window_params = [{transform_indices = @transform_0, window_bounds = array<i64: 1, 32, 16>}, {pipeline_mode = #tpu.pipeline_mode<synchronous>, transform_indices = @transform_1, window_bounds = array<i64: 32, 384>}, {pipeline_mode = #tpu.pipeline_mode<synchronous>, transform_indices = @transform_2, window_bounds = array<i64: 16, 384>}, {transform_indices = @transform_3, window_bounds = array<i64: 2048, 256>}, {transform_indices = @transform_4, window_bounds = array<i64: 1, 256>}, {transform_indices = @transform_5, window_bounds = array<i64: 1, 2, 256>}]} {
    %c0_i32 = arith.constant 0 : i32
    %0 = arith.cmpi eq, %arg1, %c0_i32 : i32
    %1 = arith.extui %0 : i1 to i32
    %c0_i32_0 = arith.constant 0 : i32
    %2 = arith.cmpi ne, %1, %c0_i32_0 : i32
    scf.if %2 {
      %c0_9 = arith.constant 0 : index
      %c0_10 = arith.constant 0 : index
      %c0_11 = arith.constant 0 : index
      %12 = vector.load %arg2[%c0_9, %c0_10, %c0_11] : memref<1x32x16xbf16, #tpu.memory_space<vmem>>, vector<1x32x16xbf16>
      %13 = vector.shape_cast %12 : vector<1x32x16xbf16> to vector<32x16xbf16>
      %c0_12 = arith.constant 0 : index
      %c0_13 = arith.constant 0 : index
      %14 = vector.load %arg4[%c0_12, %c0_13] : memref<16x384xbf16, #tpu.memory_space<vmem>>, vector<16x384xbf16>
      %cst_14 = arith.constant dense<0.000000e+00> : vector<32x384xf32>
      %15 = tpu.matmul %13, %14, %cst_14 {dimension_numbers = #tpu.dot_dimension_numbers<[1], [0], [0], [1], [0, 0, 1, 1], [], []>} : vector<32x16xbf16>, vector<16x384xbf16>, vector<32x384xf32> -> vector<32x384xf32>
      %c0_15 = arith.constant 0 : index
      %c0_16 = arith.constant 0 : index
      %16 = vector.load %arg3[%c0_15, %c0_16] : memref<32x384xf32, #tpu.memory_space<vmem>>, vector<32x384xf32>
      %17 = arith.addf %15, %16 : vector<32x384xf32>
      %18 = vector.extract_strided_slice %17 {offsets = [0, 0], sizes = [32, 128], strides = [1, 1]} : vector<32x384xf32> to vector<32x128xf32>
      %19 = vector.extract_strided_slice %17 {offsets = [0, 128], sizes = [32, 128], strides = [1, 1]} : vector<32x384xf32> to vector<32x128xf32>
      %20 = vector.extract_strided_slice %17 {offsets = [0, 256], sizes = [32, 128], strides = [1, 1]} : vector<32x384xf32> to vector<32x128xf32>
      %21 = tpu.transpose %19, [1, 0] : vector<32x128xf32> -> vector<128x32xf32>
      %cst_17 = arith.constant dense<0.000000e+00> : vector<32x32xf32>
      %22 = tpu.matmul %18, %21, %cst_17 {dimension_numbers = #tpu.dot_dimension_numbers<[1], [0], [0], [1], [0, 0, 1, 1], [], []>} : vector<32x128xf32>, vector<128x32xf32>, vector<32x32xf32> -> vector<32x32xf32>
      %23 = tpu.iota {dimensions = array<i32: 0>} : vector<32x32xi32>
      %24 = tpu.iota {dimensions = array<i32: 1>} : vector<32x32xi32>
      %25 = arith.cmpi sle, %24, %23 : vector<32x32xi32>
      %cst_18 = arith.constant -1.000000e+30 : f32
      %26 = vector.broadcast %cst_18 : f32 to vector<32x32xf32>
      %27 = arith.select %25, %22, %26 : vector<32x32xi1>, vector<32x32xf32>
      %cst_19 = arith.constant dense<0xFF800000> : vector<32xf32>
      %28 = vector.multi_reduction <maximumf>, %27, %cst_19 [1] : vector<32x32xf32> to vector<32xf32>
      %29 = vector.shape_cast %28 : vector<32xf32> to vector<32x1xf32>
      %30 = vector.broadcast %29 : vector<32x1xf32> to vector<32x32xf32>
      %31 = arith.subf %27, %30 : vector<32x32xf32>
      %32 = math.exp %31 : vector<32x32xf32>
      %cst_20 = arith.constant dense<0.000000e+00> : vector<32xf32>
      %33 = vector.multi_reduction <add>, %32, %cst_20 [1] : vector<32x32xf32> to vector<32xf32>
      %34 = vector.shape_cast %33 : vector<32xf32> to vector<32x1xf32>
      %35 = tpu.reciprocal %34 {approx = true} : vector<32x1xf32> -> vector<32x1xf32>
      %36 = vector.broadcast %35 : vector<32x1xf32> to vector<32x32xf32>
      %37 = arith.mulf %32, %36 : vector<32x32xf32>
      %38 = arith.truncf %37 : vector<32x32xf32> to vector<32x32xbf16>
      %39 = arith.truncf %20 : vector<32x128xf32> to vector<32x128xbf16>
      %cst_21 = arith.constant dense<0.000000e+00> : vector<32x128xf32>
      %40 = tpu.matmul %38, %39, %cst_21 {dimension_numbers = #tpu.dot_dimension_numbers<[1], [0], [0], [1], [0, 0, 1, 1], [], []>} : vector<32x32xbf16>, vector<32x128xbf16>, vector<32x128xf32> -> vector<32x128xf32>
      %41 = vector.shape_cast %40 : vector<32x128xf32> to vector<2x2048xf32>
      %42 = arith.truncf %41 : vector<2x2048xf32> to vector<2x2048xbf16>
      %c0_22 = arith.constant 0 : index
      %c0_23 = arith.constant 0 : index
      %43 = vector.load %arg8[%c0_22, %c0_23] : memref<2x2048xbf16, #tpu.memory_space<vmem>>, vector<2x2048xbf16>
      tpu.vector_store %arg8[%c0_22, %c0_23], %42 {strides = array<i32>} : memref<2x2048xbf16, #tpu.memory_space<vmem>>, vector<2x2048xbf16>,
    } else {
    }
    %c0 = arith.constant 0 : index
    %c0_1 = arith.constant 0 : index
    %3 = vector.load %arg8[%c0, %c0_1] : memref<2x2048xbf16, #tpu.memory_space<vmem>>, vector<2x2048xbf16>
    %c0_2 = arith.constant 0 : index
    %c0_3 = arith.constant 0 : index
    %4 = vector.load %arg5[%c0_2, %c0_3] : memref<2048x256xbf16, #tpu.memory_space<vmem>>, vector<2048x256xbf16>
    %cst = arith.constant dense<0.000000e+00> : vector<2x256xf32>
    %5 = tpu.matmul %3, %4, %cst {dimension_numbers = #tpu.dot_dimension_numbers<[1], [0], [0], [1], [0, 0, 1, 1], [], []>} : vector<2x2048xbf16>, vector<2048x256xbf16>, vector<2x256xf32> -> vector<2x256xf32>
    %c0_4 = arith.constant 0 : index
    %c0_5 = arith.constant 0 : index
    %6 = vector.load %arg6[%c0_4, %c0_5] : memref<1x256xf32, #tpu.memory_space<vmem>>, vector<1x256xf32>
    %7 = vector.broadcast %6 : vector<1x256xf32> to vector<2x256xf32>
    %8 = arith.addf %5, %7 : vector<2x256xf32>
    %c0_6 = arith.constant 0 : index
    %c0_7 = arith.constant 0 : index
    %c0_8 = arith.constant 0 : index
    %9 = vector.load %arg7[%c0_6, %c0_7, %c0_8] : memref<1x2x256xf32, #tpu.memory_space<vmem>>, vector<1x2x256xf32>
    %10 = vector.shape_cast %9 : vector<1x2x256xf32> to vector<2x256xf32>
    %11 = vector.shape_cast %8 : vector<2x256xf32> to vector<1x2x256xf32>
    tpu.vector_store %arg7[%c0_6, %c0_7, %c0_8], %11 {strides = array<i32>} : memref<1x2x256xf32, #tpu.memory_space<vmem>>, vector<1x2x256xf32>,
    return
  }
  func.func @transform_0(%arg0: i32, %arg1: i32) -> (i32, i32, i32) {
    %c0_i32 = arith.constant 0 : i32
    %c0_i32_0 = arith.constant 0 : i32
    %c0_i32_1 = arith.constant 0 : i32
    return %arg0, %c0_i32, %c0_i32_0 : i32, i32, i32
  }
  func.func @transform_1(%arg0: i32, %arg1: i32) -> (i32, i32) {
    %c0_i32 = arith.constant 0 : i32
    %c0_i32_0 = arith.constant 0 : i32
    %c0_i32_1 = arith.constant 0 : i32
    return %c0_i32, %c0_i32_0 : i32, i32
  }
  func.func @transform_2(%arg0: i32, %arg1: i32) -> (i32, i32) {
    %c0_i32 = arith.constant 0 : i32
    %c0_i32_0 = arith.constant 0 : i32
    %c0_i32_1 = arith.constant 0 : i32
    return %c0_i32, %c0_i32_0 : i32, i32
  }
  func.func @transform_3(%arg0: i32, %arg1: i32) -> (i32, i32) {
    %c0_i32 = arith.constant 0 : i32
    %c0_i32_0 = arith.constant 0 : i32
    return %c0_i32, %arg1 : i32, i32
  }
  func.func @transform_4(%arg0: i32, %arg1: i32) -> (i32, i32) {
    %c0_i32 = arith.constant 0 : i32
    %c0_i32_0 = arith.constant 0 : i32
    return %c0_i32, %arg1 : i32, i32
  }
  func.func @transform_5(%arg0: i32, %arg1: i32) -> (i32, i32, i32) {
    %c0_i32 = arith.constant 0 : i32
    %c0_i32_0 = arith.constant 0 : i32
    return %arg0, %c0_i32, %arg1 : i32, i32, i32
  }
}

</mosaic_0001>

<bundles_post_ra>
// kernel: causal_ms_step_forward.1
= control target key start
LH: loop header
LB: loop body
LE: loop exit
PB: predicated region body
PF: predicated region fallthrough
CT: control target
= control target key end

     0   :  { %10 = vsyncpa [#allocation4], 0  ;;  %s3893_s18 = smov 0   ;;  %s3895_s19 = smov 0   ;;  %s4106_s0 = inlined_call_operand.vmem [shape: bf16[2,32,16], index: 0, kind: input, shape index: {}]   ;;  %s4107_s1 = inlined_call_operand.vmem [shape: f32[32,384], index: 1, kind: input, shape index: {}]   ;;  %s4108_s2 = inlined_call_operand.vmem [shape: bf16[16,384], index: 2, kind: input, shape index: {}]   ;;  %s4109_s3 = inlined_call_operand.hbm [shape: bf16[2048,256], index: 3, kind: input, shape index: {}]   ;;  %s4110_s4 = inlined_call_operand.vmem [shape: f32[1,256], index: 4, kind: input, shape index: {}]   ;;  %s4111_s5 = inlined_call_operand.vmem [shape: f32[2,2,256], index: 5, kind: output, shape index: {}]  }
   0x1   :  { %s3897_s20 = smov 0  }
   0x2 LB: > { %s3022_s21 = sadd.s32 4294967295, %s3856_s20   ;;  %s28_s22 = sadd.s32 1, %s3852_s19  ;;  %s3856_s20 = sphi %s3897_s20, %s16_s20   ;;  %s3852_s19 = sphi %s3895_s19, %s4115_s19   ;;  %s3848_s18 = sphi %s3893_s18, %s4114_s18  }
   0x3   : > { %p30_p0 = scmp.ge.s32.totalorder %s28_s22, 2  ;;  %p3024_p1 = scmp.ge.s32.totalorder %s3856_s20, 1 }
   0x4   : > { %p181_p2 = scmp.lt.s32.totalorder %s3856_s20, 3  ;;  %p3918_p4 = scmp.eq.s32.totalorder %s3022_s21, 0 }
   0x5   : > { %s4117_s22 = smov (%p30_p0, %s28_s22), 0  ;;  %s3858_s25 = smov [#allocation3]  }
   0x6   : > { %p3914_p3 = pnand %p3024_p1, %p181_p2  ;;  %s202_s26 = sshll.u32 %s3858_s25, 4  ;;  %s203_s26 = int_to_ptr.vmem [resolvable:$true] %s202_s26 }
   0x7   : > { %s3815_s27 = scalar_lea.vmem %s203_s26, 32768  ;;  %p3823_p11 = scmp.lt.s32.totalorder %s203_s26, %s203_s26 }
   0x8   : > { %p3363_p5 = pneg %p3914_p3  ;;  %p3816_p8 = scmp.ne.s32.totalorder %s203_s26, %s3815_s27 }
   0x9   : > { %p3824_p12 = scmp.lt.s32.totalorder %s3815_s27, %s3815_s27 }
   0xa   : > { %p3364_p6 = pnand %p3918_p4, %p3363_p5 }
   0xb   : > { %p3825_p13 = por %p3824_p12, %p3823_p11 }
   0xc   : > { %p3806_p7 = pneg %p3364_p6 }
   0xe   : > { %p3818_p9 = pnand %p3816_p8, %p3806_p7 }
  0x10   : > { %p3819_p10 = pneg %p3818_p9 }
  0x12   : > { %p3826_p0 = pnand %p3825_p13, %p3819_p10 }
  0x14   : > { %3829 = shalt.err (!%p3826_p0)
}
  0x15   : > { %s3859_s28 = smov 128   ;;  %s3860_s29 = smov 8  }
  0x16   : > { %3366 = dma.hbm_to_vmem [thread:$0]  (!%p3364_p6), %s4109_s3, 32768, %s203_s26, [#allocation4], %s3859_s28, %s3859_s28, %s3860_s29  }
  0x17   : > { %234 = sbr.rel (%p3914_p3) target bundleno = 1394 (0x572), region = 40 }
  0x1c   : > { %3843 = dma.done.wait (%p3918_p4), [#allocation4], 32768  }
  0x1d   : > { %3845 = vsyncadd (%p3918_p4), [#allocation4], 4294934528  ;;  %p270_p1 = scmp.lt.s32.totalorder %s3848_s18, 1  ;;  %v3861_v0 = vmov 0   ;;  %v3398_v1 = vld [vmem:[%s4108_s2 + $0x4] ss:$12 sps:$4 sm:$0xff]   ;;  %v536_v30 = vlaneseq }
  0x1e   : > { %381 = vmatprep.mubr.bf16.mxu0 %v3861_v0  ;;  %v3400_v2 = vld [vmem:[%s4108_s2] ss:$12 sps:$4 sm:$0xff]   ;;  %363 = vmatprep.subr.bf16.mxu0 %v3398_v1  ;;  %vm342_vm0 = vcmask 130048   ;;  %v314_v14 = vld [vmem:[%s4107_s1 + $0x50] sm:$0xff]  ;;  %v311_v15 = vld [vmem:[%s4107_s1 + $0x38] sm:$0xff]  ;;  %vm551_vm3 = vcmask 261120  }
  0x1f   : > { %s4119_s18 = smov (!%p270_p1, %s3848_s18), 1  ;;  %364 = vmatpush1.bf16.msra.mxu0 %v3400_v2  ;;  %v304_v5 = vld [vmem:[%s4107_s1] sm:$0xff]  ;;  %v305_v21 = vld [vmem:[%s4107_s1 + $0x8] sm:$0xff]  ;;  %v307_v23 = vld [vmem:[%s4107_s1 + $0x18] sm:$0xff]  ;;  %v3980_v31 = vshrl.u32 %v536_v30, 7  ;;  %v542_v33 = vand.u32 127, %v536_v30 }
  0x20   : > { %s3312_s7 = sshll.u32 %s4119_s18, 4  ;;  %v308_v19 = vld [vmem:[%s4107_s1 + $0x20] sm:$0xff]  ;;  %v310_v24 = vld [vmem:[%s4107_s1 + $0x30] sm:$0xff]  ;;  %v313_v27 = vld [vmem:[%s4107_s1 + $0x48] sm:$0xff]  ;;  %s3313_s26 = sshll.u32 %s4119_s18, 2 }
  0x21   : > { %s274_s10 = scalar_lea.vmem %s4106_s0, %s3312_s7  ;;  %v3403_v29 = vld [vmem:[%s4108_s2 + $0x8] ss:$12 sps:$4 sm:$0xff]   ;;  %v538_v32 = vadd.s32 8, %v3980_v31  ;;  %vm543_vm1 = vcmp.le.s32.totalorder %v542_v33, %v3980_v31  ;;  %v539_v35 = vadd.s32 16, %v3980_v31  ;;  %v540_v37 = vadd.s32 24, %v3980_v31  ;;  %s289_s29 = scalar_lea.vmem %s4111_s5, %s3313_s26 }
  0x22   : > { %v3401_v3 = vld [vmem:[%s274_s10] sm:$0xff]   ;;  %v3402_v4 = vld [vmem:[%s274_s10 + $0x8] sm:$0xff]   ;;  %3331 = vmatprep.subr.bf16.mxu1 %v3403_v29 }
  0x23   : > { %3333 = vmatprep.mubr.msk.bf16.mxu1 %vm342_vm0, %v3401_v3  ;;  %3039 = vmatmul.mubr.msk.bf16.vlgmr.msra.gmra.mxu0 %vm342_vm0, %v3401_v3  ;;  %vm544_vm2 = vcmp.le.s32.totalorder %v542_v33, %v538_v32  ;;  %vm545_vm4 = vcmp.le.s32.totalorder %v542_v33, %v539_v35  ;;  %vm546_vm5 = vcmp.le.s32.totalorder %v542_v33, %v540_v37  ;;  %v3439_v30 = vld [vmem:[#allocation3 + $0x124] ss:$8 sps:$4 sm:$0xff]   ;;  %v3443_v32 = vld [vmem:[#allocation3 + $0x110] ss:$8 sps:$4 sm:$0xff]   ;;  %v3445_v33 = vld [vmem:[#allocation3 + $0x114] ss:$8 sps:$4 sm:$0xff]  }
  0x24   : > { %391 = vmatprep.mubr.bf16.mxu0 %v3861_v0  ;;  %3332 = vmatpush3.bf16.msra.mxu1 %v3403_v29  ;;  %v3437_v29 = vld [vmem:[#allocation3 + $0x120] ss:$8 sps:$4 sm:$0xff]   ;;  %v3451_v35 = vld [vmem:[#allocation3 + $0x104] ss:$8 sps:$4 sm:$0xff]   ;;  %v3457_v37 = vld [vmem:[#allocation3 + $0x1f4] ss:$8 sps:$4 sm:$0xff]  }
  0x27   : > { %3334 = vmatmul.mubr.msk.bf16.vlgmr.msra.gmra.mxu1 %vm342_vm0, %v3402_v4 }
  0x2b   : > { %3040 = vmatmul.mubr.msk.bf16.gmra.mxu0 %vm342_vm0, %v3402_v4 }
  0xe3   : > { %v383_v6 = vpop.f32.mrf.mxu0 }
  0xe4   : > { %v384_v7 = vadd.f32 %v383_v6, %v304_v5  ;;  %v312_v5 = vld [vmem:[%s4107_s1 + $0x40] sm:$0xff] }
  0xe5   : > { %v385_v8 = vpop.f32.mrf.mxu0 }
  0xe6   : > { %3345 = vmatprep.mubr.f32.mxu0 %v384_v7  ;;  %v386_v22 = vadd.f32 %v385_v8, %v305_v21  ;;  %v306_v8 = vld [vmem:[%s4107_s1 + $0x10] sm:$0xff]  ;;  %v3413_v21 = vld [vmem:[#allocation3 + $0x160] ss:$8 sps:$4 sm:$0xff]  }
  0xe7   : > { %v387_v9 = vpop.f32.mrf.mxu0  ;;  %v3335_v4 = vpop.f32.mrf.mxu1 }
  0xe8   : > { %v388_v25 = vadd.f32 %v387_v9, %v307_v23  ;;  %v445_v7 = vadd.f32 %v3335_v4, %v312_v5  ;;  %v315_v9 = vld [vmem:[%s4107_s1 + $0x58] sm:$0xff]  ;;  %v3458_v5 = vld [vmem:[#allocation3 + $0xe0] ss:$8 sps:$4 sm:$0xff]  }
  0xe9   : > { %v389_v10 = vpop.f32.mrf.mxu0  ;;  %v436_v6 = vpop.f32.mrf.mxu1  ;;  %v3419_v23 = vld [vmem:[#allocation3 + $0x150] ss:$8 sps:$4 sm:$0xff]  }
  0xea   : > { %v390_v20 = vadd.f32 %v389_v10, %v308_v19  ;;  %v3407_v19 = vld [vmem:[#allocation3 + $0x170] ss:$8 sps:$4 sm:$0xff]  }
  0xeb   : > { %v393_v11 = vpop.f32.mrf.mxu0  ;;  %v3336_v10 = vpop.f32.mrf.mxu1  ;;  %v3452_v4 = vld [vmem:[#allocation3 + $0xf0] ss:$8 sps:$4 sm:$0xff]  }
  0xec   : > { %v394_v26 = vadd.f32 %v393_v11, %v310_v24  ;;  %v448_v11 = vadd.f32 %v3336_v10, %v315_v9  ;;  %v3421_v24 = vld [vmem:[#allocation3 + $0x154] ss:$8 sps:$4 sm:$0xff]   ;;  %v3464_v10 = vld [vmem:[#allocation3 + $0xd0] ss:$8 sps:$4 sm:$0xff]  }
  0xed   : > { %v395_v12 = vpop.f32.mrf.mxu0  ;;  %v3466_v9 = vld [vmem:[#allocation3 + $0xd4] ss:$8 sps:$4 sm:$0xff]  }
  0xee   : > { %v396_v18 = vadd.f32 %v395_v12, %v311_v15  ;;  %v437_v12 = vadd.f32 %v436_v6, %v306_v8  ;;  %v309_v15 = vld [vmem:[%s4107_s1 + $0x28] sm:$0xff] }
  0xef   : > { %v397_v13 = vpop.f32.mrf.mxu0  ;;  %v3460_v6 = vld [vmem:[#allocation3 + $0xe4] ss:$8 sps:$4 sm:$0xff]   ;;  %v3461_v8 = vld [vmem:[#allocation3 + $0x1e0] ss:$8 sps:$4 sm:$0xff]  }
  0xf0   : > { %v398_v28 = vadd.f32 %v397_v13, %v313_v27  ;;  %v599_v13 = vpack.c.bf16 %v448_v11, %v445_v7  ;;  %v3431_v27 = vld [vmem:[#allocation3 + $0x130] ss:$8 sps:$4 sm:$0xff]   ;;  %v3463_v7 = vld [vmem:[#allocation3 + $0x1e4] ss:$8 sps:$4 sm:$0xff]   ;;  %v3469_v11 = vld [vmem:[#allocation3 + $0x1d4] ss:$8 sps:$4 sm:$0xff]  }
  0xf1   : > { %v399_v16 = vpop.f32.mrf.mxu0 }
  0xf2   : > { %v400_v17 = vadd.f32 %v399_v16, %v314_v14  ;;  %v439_v14 = vpop.f32.mrf.mxu1  ;;  %3351 = vmatprep.subr.bf16.mxu1 %v599_v13 }
  0xf3   : > { %v440_v16 = vadd.f32 %v439_v14, %v309_v15  ;;  %3352 = vmatpush3.bf16.msra.mxu1 %v599_v13  ;;  %v3472_v13 = vld [vmem:[#allocation3 + $0xc4] ss:$8 sps:$4 sm:$0xff]   ;;  %v3470_v14 = vld [vmem:[#allocation3 + $0xc0] ss:$8 sps:$4 sm:$0xff]  }
  0xf4   : > { %3337 = vmatprep.subr.mxu0 %v400_v17  ;;  %v3475_v15 = vld [vmem:[#allocation3 + $0x1c4] ss:$8 sps:$4 sm:$0xff]  }
  0xf5   : > { %3338 = vmatpush3.xpose.msra.mxu0 %v400_v17  ;;  %v598_v17 = vpack.c.bf16 %v440_v16, %v437_v12  ;;  %v3467_v12 = vld [vmem:[#allocation3 + $0x1d0] ss:$8 sps:$4 sm:$0xff]   ;;  %v3473_v16 = vld [vmem:[#allocation3 + $0x1c0] ss:$8 sps:$4 sm:$0xff]  }
  0xf6   : > { %3339 = vmatprep.subr.mxu0 %v396_v18 }
  0xf7   : > { %3353 = vmatprep.subr.bf16.mxu1 %v598_v17 }
  0xf8   : > { %3354 = vmatpush3.bf16.msra.mxu1 %v598_v17  ;;  %v3478_v17 = vld [vmem:[#allocation3 + $0xb4] ss:$8 sps:$4 sm:$0xff]  }
  0xf9   : > { %3340 = vmatpush3.xpose.msra.mxu0 %v396_v18  ;;  %v3406_v18 = vld [vmem:[#allocation3 + $0x74] ss:$8 sps:$4 sm:$0xff]  }
  0xfa   : > { %3341 = vmatprep.subr.mxu0 %v390_v20  ;;  %2575 = vmatprep.subr.bf16.mxu1 %v3406_v18  ;;  %v3476_v18 = vld [vmem:[#allocation3 + $0xb0] ss:$8 sps:$4 sm:$0xff]  }
  0xfd   : > { %3342 = vmatpush3.xpose.msra.mxu0 %v390_v20  ;;  %v3409_v20 = vld [vmem:[#allocation3 + $0x174] ss:$8 sps:$4 sm:$0xff]  }
  0xfe   : > { %3343 = vmatprep.subr.mxu0 %v386_v22 }
 0x101   : > { %3344 = vmatpush3.xpose.msra.mxu0 %v386_v22  ;;  %v3415_v22 = vld [vmem:[#allocation3 + $0x164] ss:$8 sps:$4 sm:$0xff]  }
 0x102   : > { %2616 = vmatprep.subr.bf16.mxu0 %v3409_v20  ;;  %v3479_v20 = vld [vmem:[#allocation3 + $0x1b0] ss:$8 sps:$4 sm:$0xff]  }
 0x104   : > { %3346 = vmatmul.mubr.f32.vlgmr.msra.gmra.mxu0 %v388_v25  ;;  %v3425_v25 = vld [vmem:[#allocation3 + $0x140] ss:$8 sps:$4 sm:$0xff]  }
 0x105   : > { %3348 = vmatprep.mubr.f32.mxu0 %v394_v26  ;;  %2617 = vmatpush1.bf16.msra.mxu0 %v3407_v19  ;;  %v3427_v26 = vld [vmem:[#allocation3 + $0x144] ss:$8 sps:$4 sm:$0xff]   ;;  %v3481_v19 = vld [vmem:[#allocation3 + $0x1b4] ss:$8 sps:$4 sm:$0xff]  }
 0x106   : > { %2618 = vmatprep.subr.bf16.mxu0 %v3415_v22  ;;  %v3482_v22 = vld [vmem:[#allocation3 + $0xa0] ss:$8 sps:$4 sm:$0xff]  }
 0x108   : > { %3349 = vmatmul.mubr.f32.gmra.mxu0 %v398_v28  ;;  %v3433_v28 = vld [vmem:[#allocation3 + $0x134] ss:$8 sps:$4 sm:$0xff]  }
 0x109   : > { %2619 = vmatpush1.bf16.msra.mxu0 %v3413_v21  ;;  %v3484_v21 = vld [vmem:[#allocation3 + $0xa4] ss:$8 sps:$4 sm:$0xff]  }
 0x10a   : > { %2620 = vmatprep.subr.bf16.mxu0 %v3421_v24  ;;  %v3485_v24 = vld [vmem:[#allocation3 + $0x1a0] ss:$8 sps:$4 sm:$0xff]  }
 0x10d   : > { %2621 = vmatpush1.bf16.msra.mxu0 %v3419_v23  ;;  %v3487_v23 = vld [vmem:[#allocation3 + $0x1a4] ss:$8 sps:$4 sm:$0xff]  }
 0x10e   : > { %2622 = vmatprep.subr.bf16.mxu0 %v3427_v26  ;;  %v3488_v26 = vld [vmem:[#allocation3 + $0x90] ss:$8 sps:$4 sm:$0xff]  }
 0x111   : > { %2623 = vmatpush1.bf16.msra.mxu0 %v3425_v25  ;;  %v3490_v25 = vld [vmem:[#allocation3 + $0x94] ss:$8 sps:$4 sm:$0xff]  }
 0x112   : > { %2624 = vmatprep.subr.bf16.mxu0 %v3433_v28  ;;  %v3493_v28 = vld [vmem:[#allocation3 + $0x194] ss:$8 sps:$4 sm:$0xff]  }
 0x115   : > { %2625 = vmatpush1.bf16.msra.mxu0 %v3431_v27  ;;  %v3491_v27 = vld [vmem:[#allocation3 + $0x190] ss:$8 sps:$4 sm:$0xff]  }
 0x116   : > { %2626 = vmatprep.subr.bf16.mxu0 %v3439_v30  ;;  %v3496_v30 = vld [vmem:[#allocation3 + $0x84] ss:$8 sps:$4 sm:$0xff]  }
 0x119   : > { %2627 = vmatpush1.bf16.msra.mxu0 %v3437_v29  ;;  %v3494_v29 = vld [vmem:[#allocation3 + $0x80] ss:$8 sps:$4 sm:$0xff]  }
 0x11a   : > { %2628 = vmatprep.subr.bf16.mxu0 %v3445_v33  ;;  %v3497_v33 = vld [vmem:[#allocation3 + $0x180] ss:$8 sps:$4 sm:$0xff]  }
 0x11d   : > { %2629 = vmatpush1.bf16.msra.mxu0 %v3443_v32  ;;  %v3499_v32 = vld [vmem:[#allocation3 + $0x184] ss:$8 sps:$4 sm:$0xff]  }
 0x11e   : > { %2630 = vmatprep.subr.bf16.mxu0 %v3451_v35  ;;  %v3505_v35 = vld [vmem:[#allocation3 + $0x374] ss:$8 sps:$4 sm:$0xff]  }
 0x1c4   : > { %v3347_v34 = vpop.f32.mrf.mxu0 }
 0x1c5   : > { %v548_v41 = vsel %vm544_vm2, %v3347_v34, -1e+30  ;;  %v3449_v34 = vld [vmem:[#allocation3 + $0x100] ss:$8 sps:$4 sm:$0xff]  }
 0x1c6   : > { %v517_v36 = vpop.f32.mrf.mxu0  ;;  %v555_v44 = vsel %vm551_vm3, %v548_v41, -inf  ;;  %2631 = vmatpush1.bf16.msra.mxu0 %v3449_v34  ;;  %v3502_v34 = vld [vmem:[#allocation3 + $0x274] ss:$8 sps:$4 sm:$0xff]  }
 0x1c7   : > { %v547_v38 = vsel %vm543_vm1, %v517_v36, -1e+30  ;;  %v3455_v36 = vld [vmem:[#allocation3 + $0x1f0] ss:$8 sps:$4 sm:$0xff]   ;;  %2632 = vmatprep.subr.bf16.mxu0 %v3457_v37 }
 0x1c8   : > { %v3350_v39 = vpop.f32.mrf.mxu0  ;;  %v552_v40 = vsel %vm551_vm3, %v547_v38, -inf }
 0x1c9   : > { %553 = vmax.xlane.f32.xlu0 %v552_v40  ;;  %v550_v46 = vsel %vm546_vm5, %v3350_v39, -1e+30 }
 0x1ca   : > { %v527_v42 = vpop.f32.mrf.mxu0  ;;  %v561_v47 = vsel %vm551_vm3, %v550_v46, -inf  ;;  %2633 = vmatpush2.bf16.msra.mxu0 %v3455_v36  ;;  %v3862_v36 = vmov 1966171168  }
 0x1cb   : > { %v549_v43 = vsel %vm545_vm4, %v527_v42, -1e+30  ;;  %2634 = vmatprep.subr.bf16.mxu0 %v3463_v7  ;;  %v662_v37 = vunpack.c.l.s4 %v3862_v36 }
 0x1cc   : > { %v558_v45 = vsel %vm551_vm3, %v549_v43, -inf }
 0x1cd   : > { %556 = vmax.xlane.f32.xlu0 %v555_v44  ;;  %559 = vmax.xlane.f32.xlu1 %v558_v45 }
 0x1ce   : > { %2635 = vmatpush2.bf16.msra.mxu0 %v3461_v8 }
 0x1cf   : > { %2636 = vmatprep.subr.bf16.mxu0 %v3469_v11 }
 0x1d1   : > { %562 = vmax.xlane.f32.xlu1 %v561_v47 }
 0x1d2   : > { %2637 = vmatpush2.bf16.msra.mxu0 %v3467_v12 }
 0x1d3   : > { %2638 = vmatprep.subr.bf16.mxu0 %v3475_v15 }
 0x1d6   : > { %2639 = vmatpush2.bf16.msra.mxu0 %v3473_v16 }
 0x1d7   : > { %2640 = vmatprep.subr.bf16.mxu0 %v3481_v19 }
 0x1da   : > { %2641 = vmatpush2.bf16.msra.mxu0 %v3479_v20 }
 0x1db   : > { %2642 = vmatprep.subr.bf16.mxu0 %v3487_v23 }
 0x1de   : > { %2643 = vmatpush2.bf16.msra.mxu0 %v3485_v24 }
 0x1df   : > { %2644 = vmatprep.subr.bf16.mxu0 %v3493_v28 }
 0x1e2   : > { %2645 = vmatpush2.bf16.msra.mxu0 %v3491_v27 }
 0x1e3   : > { %2646 = vmatprep.subr.bf16.mxu0 %v3499_v32 }
 0x1e6   : > { %2647 = vmatpush2.bf16.msra.mxu0 %v3497_v33 }
 0x1e7   : > { %2698 = vmatprep.subr.bf16.mxu0 %v3505_v35 }
 0x252   : > { %v554_v48 = vpop.xlane.xlu0 %553 }
 0x253   : > { %v564_v49 = vsub.f32 %v547_v38, %v554_v48 }
 0x255   : > { %v568_v50 = vmul.f32 1.442695, %v564_v49 }
 0x256   : > { %v557_v51 = vpop.xlane.xlu0 %556  ;;  %v560_v52 = vpop.xlane.xlu1 %559 }
 0x257   : > { %3788 = vpow2.f32 %v568_v50  ;;  %v565_v53 = vsub.f32 %v548_v41, %v557_v51  ;;  %v566_v54 = vsub.f32 %v549_v43, %v560_v52  ;;  %v3404_v51 = vld [vmem:[#allocation3 + $0x70] ss:$8 sps:$4 sm:$0xff]  }
 0x259   : > { %v570_v55 = vmul.f32 1.442695, %v565_v53  ;;  %v572_v56 = vmul.f32 1.442695, %v566_v54  ;;  %v3412_v53 = vld [vmem:[#allocation3 + $0x64] ss:$8 sps:$4 sm:$0xff]  }
 0x25a   : > { %v563_v57 = vpop.xlane.xlu1 %562  ;;  %v3410_v54 = vld [vmem:[#allocation3 + $0x60] ss:$8 sps:$4 sm:$0xff]  }
 0x25b   : > { %3790 = vpow2.f32 %v570_v55  ;;  %v567_v58 = vsub.f32 %v550_v46, %v563_v57  ;;  %v3418_v55 = vld [vmem:[#allocation3 + $0x54] ss:$8 sps:$4 sm:$0xff]   ;;  %v3424_v57 = vld [vmem:[#allocation3 + $0x44] ss:$8 sps:$4 sm:$0xff]  }
 0x25c   : > { %3792 = vpow2.f32 %v572_v56  ;;  %v3416_v56 = vld [vmem:[#allocation3 + $0x50] ss:$8 sps:$4 sm:$0xff]  }
 0x25d   : > { %v574_v59 = vmul.f32 1.442695, %v567_v58  ;;  %v3422_v58 = vld [vmem:[#allocation3 + $0x40] ss:$8 sps:$4 sm:$0xff]  }
 0x25f   : > { %3794 = vpow2.f32 %v574_v59  ;;  %v3430_v59 = vld [vmem:[#allocation3 + $0x34] ss:$8 sps:$4 sm:$0xff]  }
 0x264   : > { %v3990_v60 = vpop.eup %3788 }
 0x265   : > { %v576_v61 = vsel %vm551_vm3, %v3990_v60, 0.0 }
 0x266   : > { %577 = vadd.xlane.f32.xlu0 %v576_v61  ;;  %v3436_v61 = vld [vmem:[#allocation3 + $0x24] ss:$8 sps:$4 sm:$0xff]  }
 0x268   : > { %v3994_v62 = vpop.eup %3790 }
 0x269   : > { %v3996_v63 = vpop.eup %3792  ;;  %v579_v0 = vsel %vm551_vm3, %v3994_v62, 0.0 }
 0x26a   : > { %580 = vadd.xlane.f32.xlu1 %v579_v0  ;;  %v582_v1 = vsel %vm551_vm3, %v3996_v63, 0.0  ;;  %v3440_v0 = vld [vmem:[#allocation3 + $0x10] ss:$8 sps:$4 sm:$0xff]  }
 0x26b   : > { %583 = vadd.xlane.f32.xlu0 %v582_v1  ;;  %v3448_v1 = vld [vmem:[#allocation3 + $0x4] ss:$8 sps:$4 sm:$0xff]  }
 0x26c   : > { %v4002_v2 = vpop.eup %3794 }
 0x26d   : > { %v585_v3 = vsel %vm551_vm3, %v4002_v2, 0.0 }
 0x26e   : > { %586 = vadd.xlane.f32.xlu1 %v585_v3  ;;  %v3454_v3 = vld [vmem:[#allocation3 + $0xf4] ss:$8 sps:$4 sm:$0xff]  }
 0x2ef   : > { %v578_v38 = vpop.xlane.xlu0 %577 }
 0x2f0   : > { %3796 = vrcp.f32 %v578_v38  ;;  %v663_v38 = vunpack.c.0.s8 %v662_v37 }
 0x2f3   : > { %v581_v39 = vpop.xlane.xlu1 %580 }
 0x2f4   : > { %v584_v40 = vpop.xlane.xlu0 %583  ;;  %3798 = vrcp.f32 %v581_v39 }
 0x2f5   : > { %3800 = vrcp.f32 %v584_v40  ;;  %v4025_v40 = vsub.s32 %v663_v38, %v3980_v31 }
 0x2f7   : > { %v587_v41 = vpop.xlane.xlu1 %586 }
 0x2f8   : > { %3802 = vrcp.f32 %v587_v41 }
 0x2fd   : > { %v3797_v42 = vpop.eup %3796 }
 0x2fe   : > { %v592_v44 = vmul.f32 %v3797_v42, %v3990_v60  ;;  %v3428_v60 = vld [vmem:[#allocation3 + $0x30] ss:$8 sps:$4 sm:$0xff]  }
 0x301   : > { %v3799_v43 = vpop.eup %3798 }
 0x302   : > { %v593_v45 = vmul.f32 %v3799_v43, %v3994_v62  ;;  %v3801_v46 = vpop.eup %3800  ;;  %v3434_v62 = vld [vmem:[#allocation3 + $0x20] ss:$8 sps:$4 sm:$0xff]  }
 0x303   : > { %v594_v49 = vmul.f32 %v3801_v46, %v3996_v63  ;;  %v3442_v63 = vld [vmem:[#allocation3 + $0x14] ss:$8 sps:$4 sm:$0xff]  }
 0x304   : > { %v596_v47 = vpack.c.bf16 %v593_v45, %v592_v44 }
 0x305   : > { %v3803_v48 = vpop.eup %3802 }
 0x306   : > { %v595_v50 = vmul.f32 %v3803_v48, %v4002_v2  ;;  %3355 = vmatprep.mubr.msk.bf16.mxu1 %vm551_vm3, %v596_v47  ;;  %v3446_v2 = vld [vmem:[#allocation3] ss:$8 sps:$4 sm:$0xff]  }
 0x308   : > { %v597_v52 = vpack.c.bf16 %v595_v50, %v594_v49 }
 0x30a   : > { %3356 = vmatmul.mubr.msk.bf16.vlgmr.msra.gmra.mxu1 %vm551_vm3, %v597_v52 }
 0x30b   : > { %2576 = vmatpush1.bf16.msra.mxu1 %v3404_v51 }
 0x30c   : > { %2577 = vmatprep.subr.bf16.mxu1 %v3412_v53 }
 0x30f   : > { %2578 = vmatpush1.bf16.msra.mxu1 %v3410_v54 }
 0x310   : > { %2579 = vmatprep.subr.bf16.mxu1 %v3418_v55 }
 0x313   : > { %2580 = vmatpush1.bf16.msra.mxu1 %v3416_v56 }
 0x314   : > { %2581 = vmatprep.subr.bf16.mxu1 %v3424_v57 }
 0x317   : > { %2582 = vmatpush1.bf16.msra.mxu1 %v3422_v58 }
 0x318   : > { %2583 = vmatprep.subr.bf16.mxu1 %v3430_v59 }
 0x31b   : > { %2584 = vmatpush1.bf16.msra.mxu1 %v3428_v60 }
 0x31c   : > { %2585 = vmatprep.subr.bf16.mxu1 %v3436_v61 }
 0x31f   : > { %2586 = vmatpush1.bf16.msra.mxu1 %v3434_v62 }
 0x320   : > { %2587 = vmatprep.subr.bf16.mxu1 %v3442_v63 }
 0x323   : > { %2588 = vmatpush1.bf16.msra.mxu1 %v3440_v0 }
 0x324   : > { %2589 = vmatprep.subr.bf16.mxu1 %v3448_v1 }
 0x327   : > { %2590 = vmatpush1.bf16.msra.mxu1 %v3446_v2 }
 0x328   : > { %2591 = vmatprep.subr.bf16.mxu1 %v3454_v3 }
 0x32b   : > { %2592 = vmatpush2.bf16.msra.mxu1 %v3452_v4 }
 0x32c   : > { %2593 = vmatprep.subr.bf16.mxu1 %v3460_v6 }
 0x32f   : > { %2594 = vmatpush2.bf16.msra.mxu1 %v3458_v5 }
 0x330   : > { %2595 = vmatprep.subr.bf16.mxu1 %v3466_v9 }
 0x333   : > { %2596 = vmatpush2.bf16.msra.mxu1 %v3464_v10 }
 0x334   : > { %2597 = vmatprep.subr.bf16.mxu1 %v3472_v13 }
 0x337   : > { %2598 = vmatpush2.bf16.msra.mxu1 %v3470_v14 }
 0x338   : > { %2599 = vmatprep.subr.bf16.mxu1 %v3478_v17 }
 0x33b   : > { %2600 = vmatpush2.bf16.msra.mxu1 %v3476_v18 }
 0x33c   : > { %2601 = vmatprep.subr.bf16.mxu1 %v3484_v21 }
 0x33f   : > { %2602 = vmatpush2.bf16.msra.mxu1 %v3482_v22 }
 0x340   : > { %2603 = vmatprep.subr.bf16.mxu1 %v3490_v25 }
 0x343   : > { %2604 = vmatpush2.bf16.msra.mxu1 %v3488_v26 }
 0x344   : > { %2605 = vmatprep.subr.bf16.mxu1 %v3496_v30 }
 0x347   : > { %2606 = vmatpush2.bf16.msra.mxu1 %v3494_v29 }
 0x348   : > { %2657 = vmatprep.subr.bf16.mxu1 %v3502_v34 }
 0x3ca   : > { %v3357_v39 = vpop.f32.mrf.mxu1 }
 0x3cc   : > { %v640_v41 = vpop.f32.mrf.mxu1 }
 0x3cd   : > { %v659_v42 = vcombine.low %v640_v41, %v3357_v39  ;;  %v660_v43 = vcombine.high %v640_v41, %v3357_v39 }
 0x3ce   : > { %v3358_v44 = vpop.f32.mrf.mxu1 }
 0x3cf   : > { %v667_v45 = vrot.slane %v659_v42, %v4025_v40  ;;  %v674_v46 = vrot.slane %v660_v43, %v4025_v40 }
 0x3d0   : > { %v643_v47 = vpop.f32.mrf.mxu1 }
 0x3d1   : > { %v675_v48 = vcombine.high %v667_v45, %v667_v45  ;;  %v676_v49 = vcombine.high %v674_v46, %v674_v46  ;;  %v683_v50 = vrot.slane %v667_v45, %v4025_v40  ;;  %v690_v51 = vrot.slane %v674_v46, %v4025_v40  ;;  %v3500_v45 = vld [vmem:[#allocation3 + $0x270] ss:$8 sps:$4 sm:$0xff]  }
 0x3d2   : > { %v709_v52 = vcombine.low %v643_v47, %v3358_v44  ;;  %v710_v53 = vcombine.high %v643_v47, %v3358_v44 }
 0x3d3   : > { %v697_v54 = vrot.slane %v675_v48, %v4025_v40  ;;  %v704_v55 = vrot.slane %v676_v49, %v4025_v40  ;;  %v705_v56 = vcombine.high %v683_v50, %v683_v50  ;;  %v706_v57 = vcombine.high %v690_v51, %v690_v51 }
 0x3d4   : > { %v717_v58 = vrot.slane %v709_v52, %v4025_v40  ;;  %v724_v59 = vrot.slane %v710_v53, %v4025_v40  ;;  %v3511_v53 = vld [vmem:[#allocation3 + $0x364] ss:$8 sps:$4 sm:$0xff]  }
 0x3d5   : > { %v707_v60 = vcombine.high %v697_v54, %v697_v54  ;;  %v708_v61 = vcombine.high %v704_v55, %v704_v55  ;;  %v3045_v62 = vpack.c.bf16 %v697_v54, %v683_v50  ;;  %v3047_v63 = vpack.c.bf16 %v704_v55, %v690_v51  ;;  %v3503_v50 = vld [vmem:[#allocation3 + $0x370] ss:$8 sps:$4 sm:$0xff]   ;;  %v3508_v51 = vld [vmem:[#allocation3 + $0x264] ss:$8 sps:$4 sm:$0xff]  }
 0x3d6   : > { %v725_v0 = vcombine.high %v717_v58, %v717_v58  ;;  %v726_v1 = vcombine.high %v724_v59, %v724_v59  ;;  %v733_v2 = vrot.slane %v717_v58, %v4025_v40  ;;  %v740_v3 = vrot.slane %v724_v59, %v4025_v40  ;;  %v3514_v59 = vld [vmem:[#allocation3 + $0x254] ss:$8 sps:$4 sm:$0xff]  }
 0x3d7   : > { %v3046_v4 = vpack.c.bf16 %v707_v60, %v705_v56  ;;  %v3048_v5 = vpack.c.bf16 %v708_v61, %v706_v57  ;;  %v817_v6 = vrot.slane %v3045_v62, %v4025_v40  ;;  %v831_v7 = vrot.slane %v3047_v63, %v4025_v40  ;;  %v3506_v57 = vld [vmem:[#allocation3 + $0x260] ss:$8 sps:$4 sm:$0xff]   ;;  %v3517_v62 = vld [vmem:[#allocation3 + $0x354] ss:$8 sps:$4 sm:$0xff]   ;;  %v3512_v63 = vld [vmem:[#allocation3 + $0x250] ss:$8 sps:$4 sm:$0xff]  }
 0x3d8   : > { %v747_v8 = vrot.slane %v725_v0, %v4025_v40  ;;  %v754_v9 = vrot.slane %v726_v1, %v4025_v40  ;;  %v755_v12 = vcombine.high %v733_v2, %v733_v2  ;;  %v756_v13 = vcombine.high %v740_v3, %v740_v3  ;;  %v3509_v61 = vld [vmem:[#allocation3 + $0x360] ss:$8 sps:$4 sm:$0xff]   ;;  %v3520_v0 = vld [vmem:[#allocation3 + $0x244] ss:$8 sps:$4 sm:$0xff]   ;;  %v3515_v1 = vld [vmem:[#allocation3 + $0x350] ss:$8 sps:$4 sm:$0xff]  }
 0x3d9   : > { %v824_v10 = vrot.slane %v3046_v4, %v4025_v40  ;;  %v838_v11 = vrot.slane %v3048_v5, %v4025_v40  ;;  %v3526_v4 = vld [vmem:[#allocation3 + $0x234] ss:$8 sps:$4 sm:$0xff]   ;;  %v3521_v5 = vld [vmem:[#allocation3 + $0x340] ss:$8 sps:$4 sm:$0xff]  }
 0x3da   : > { %v757_v14 = vcombine.high %v747_v8, %v747_v8  ;;  %v758_v15 = vcombine.high %v754_v9, %v754_v9  ;;  %v3049_v16 = vpack.c.bf16 %v747_v8, %v733_v2  ;;  %v3051_v17 = vpack.c.bf16 %v754_v9, %v740_v3  ;;  %v3523_v2 = vld [vmem:[#allocation3 + $0x344] ss:$8 sps:$4 sm:$0xff]   ;;  %v3518_v3 = vld [vmem:[#allocation3 + $0x240] ss:$8 sps:$4 sm:$0xff]   ;;  %v3527_v9 = vld [vmem:[#allocation3 + $0x330] ss:$8 sps:$4 sm:$0xff]  }
 0x3db   : > { %v839_v18 = vcombine.low %v817_v6, %v824_v10  ;;  %v840_v19 = vcombine.low %v831_v7, %v838_v11  ;;  %v3529_v6 = vld [vmem:[#allocation3 + $0x334] ss:$8 sps:$4 sm:$0xff]   ;;  %v3524_v7 = vld [vmem:[#allocation3 + $0x230] ss:$8 sps:$4 sm:$0xff]   ;;  %v3532_v8 = vld [vmem:[#allocation3 + $0x224] ss:$8 sps:$4 sm:$0xff]  }
 0x3dc   : > { %v3050_v20 = vpack.c.bf16 %v757_v14, %v755_v12  ;;  %v3052_v21 = vpack.c.bf16 %v758_v15, %v756_v13  ;;  %v866_v24 = vrot.slane %v3049_v16, %v4025_v40  ;;  %v880_v26 = vrot.slane %v3051_v17, %v4025_v40  ;;  %v3535_v10 = vld [vmem:[#allocation3 + $0x324] ss:$8 sps:$4 sm:$0xff]   ;;  %v3530_v11 = vld [vmem:[#allocation3 + $0x220] ss:$8 sps:$4 sm:$0xff]   ;;  %v3538_v12 = vld [vmem:[#allocation3 + $0x214] ss:$8 sps:$4 sm:$0xff]  }
 0x3dd   : > { %v847_v22 = vrot.slane %v839_v18, %v4025_v40  ;;  %v854_v23 = vrot.slane %v840_v19, %v4025_v40  ;;  %v3533_v13 = vld [vmem:[#allocation3 + $0x320] ss:$8 sps:$4 sm:$0xff]   ;;  %v3541_v14 = vld [vmem:[#allocation3 + $0x314] ss:$8 sps:$4 sm:$0xff]   ;;  %v3536_v15 = vld [vmem:[#allocation3 + $0x210] ss:$8 sps:$4 sm:$0xff]  }
 0x3de   : > { %v873_v25 = vrot.slane %v3050_v20, %v4025_v40  ;;  %v887_v27 = vrot.slane %v3052_v21, %v4025_v40  ;;  %v3544_v16 = vld [vmem:[#allocation3 + $0x204] ss:$8 sps:$4 sm:$0xff]   ;;  %v3539_v17 = vld [vmem:[#allocation3 + $0x310] ss:$8 sps:$4 sm:$0xff]   ;;  %v3542_v19 = vld [vmem:[#allocation3 + $0x200] ss:$8 sps:$4 sm:$0xff]  }
 0x3df   : > { %v855_v28 = vcombine.low %v847_v22, %v854_v23  ;;  %v3314_v29 = vcombine.low %v854_v23, %v854_v23  ;;  %v3547_v18 = vld [vmem:[#allocation3 + $0x304] ss:$8 sps:$4 sm:$0xff]   ;;  %v3550_v20 = vld [vmem:[#allocation3 + $0x2f4] ss:$8 sps:$4 sm:$0xff]   ;;  %v3545_v21 = vld [vmem:[#allocation3 + $0x300] ss:$8 sps:$4 sm:$0xff]  }
 0x3e0   : > { %v888_v30 = vcombine.low %v866_v24, %v873_v25  ;;  %v889_v32 = vcombine.low %v880_v26, %v887_v27  ;;  %v3553_v22 = vld [vmem:[#allocation3 + $0x3f4] ss:$8 sps:$4 sm:$0xff]   ;;  %v3548_v23 = vld [vmem:[#allocation3 + $0x2f0] ss:$8 sps:$4 sm:$0xff]   ;;  %v3556_v24 = vld [vmem:[#allocation3 + $0x2e4] ss:$8 sps:$4 sm:$0xff]  }
 0x3e1   : > { %v1188_v33 = vrot.slane %v855_v28, %v4025_v40  ;;  %v1195_v34 = vrot.slane %v3314_v29, %v4025_v40  ;;  %v3551_v25 = vld [vmem:[#allocation3 + $0x3f0] ss:$8 sps:$4 sm:$0xff]   ;;  %v3559_v26 = vld [vmem:[#allocation3 + $0x3e4] ss:$8 sps:$4 sm:$0xff]   ;;  %v3554_v27 = vld [vmem:[#allocation3 + $0x2e0] ss:$8 sps:$4 sm:$0xff]  }
 0x3e2   : > { %v896_v35 = vrot.slane %v888_v30, %v4025_v40  ;;  %v903_v36 = vrot.slane %v889_v32, %v4025_v40  ;;  %v3562_v28 = vld [vmem:[#allocation3 + $0x2d4] ss:$8 sps:$4 sm:$0xff]   ;;  %v3557_v29 = vld [vmem:[#allocation3 + $0x3e0] ss:$8 sps:$4 sm:$0xff]   ;;  %v3560_v32 = vld [vmem:[#allocation3 + $0x2d0] ss:$8 sps:$4 sm:$0xff]  }
 0x3e3   : > { %v1196_v37 = vcombine.high %v1188_v33, %v1188_v33  ;;  %v1197_v38 = vcombine.high %v1195_v34, %v1195_v34  ;;  %v4054_v39 = vrot.slane %v1195_v34, %v4025_v40  ;;  %v1204_v41 = vrot.slane %v1188_v33, %v4025_v40  ;;  %v3565_v30 = vld [vmem:[#allocation3 + $0x3d4] ss:$8 sps:$4 sm:$0xff]   ;;  %v3568_v33 = vld [vmem:[#allocation3 + $0x2c4] ss:$8 sps:$4 sm:$0xff]   ;;  %v3563_v34 = vld [vmem:[#allocation3 + $0x3d0] ss:$8 sps:$4 sm:$0xff]  }
 0x3e4   : > { %v904_v42 = vcombine.low %v896_v35, %v903_v36  ;;  %v3315_v43 = vcombine.low %v903_v36, %v903_v36  ;;  %v3571_v35 = vld [vmem:[#allocation3 + $0x3c4] ss:$8 sps:$4 sm:$0xff]   ;;  %v3566_v36 = vld [vmem:[#allocation3 + $0x2c0] ss:$8 sps:$4 sm:$0xff]  }
 0x3e5   : > { %v1218_v44 = vrot.slane %v1196_v37, %v4025_v40  ;;  %v1225_v46 = vrot.slane %v1197_v38, %v4025_v40  ;;  %v1226_v52 = vcombine.high %v1204_v41, %v1204_v41  ;;  %v3574_v37 = vld [vmem:[#allocation3 + $0x2b4] ss:$8 sps:$4 sm:$0xff]   ;;  %v3569_v38 = vld [vmem:[#allocation3 + $0x3c0] ss:$8 sps:$4 sm:$0xff]  }
 0x3e6   : > { %v4060_v47 = vrot.slane %v904_v42, %v4025_v40  ;;  %v1244_v48 = vrot.slane %v3315_v43, %v4025_v40  ;;  %v3572_v42 = vld [vmem:[#allocation3 + $0x2b0] ss:$8 sps:$4 sm:$0xff]   ;;  %v3580_v43 = vld [vmem:[#allocation3 + $0x2a4] ss:$8 sps:$4 sm:$0xff]  }
 0x3e7   : > { %2607 = vmatprep.mubr.bf16.mxu1 %v1218_v44  ;;  %v1228_v49 = vcombine.high %v1218_v44, %v1218_v44  ;;  %v1229_v58 = vcombine.high %v1225_v46, %v1225_v46  ;;  %v3575_v44 = vld [vmem:[#allocation3 + $0x3b0] ss:$8 sps:$4 sm:$0xff]  }
 0x3e8   : > { %2608 = vmatmul.mubr.bf16.vlgmr.msra.gmra.mxu1 %v1204_v41  ;;  %v4065_v54 = vrot.slane %v4060_v47, %v4025_v40  ;;  %v1246_v55 = vcombine.high %v1244_v48, %v1244_v48  ;;  %v4068_v56 = vrot.slane %v1244_v48, %v4025_v40  ;;  %v3577_v41 = vld [vmem:[#allocation3 + $0x3b4] ss:$8 sps:$4 sm:$0xff]  }
 0x3e9   : > { %2658 = vmatpush1.bf16.msra.mxu1 %v3500_v45  ;;  %2648 = vmatprep.mubr.bf16.mxu0 %v1228_v49  ;;  %v3583_v45 = vld [vmem:[#allocation3 + $0x3a4] ss:$8 sps:$4 sm:$0xff]   ;;  %v3586_v48 = vld [vmem:[#allocation3 + $0x294] ss:$8 sps:$4 sm:$0xff]   ;;  %v3581_v49 = vld [vmem:[#allocation3 + $0x3a0] ss:$8 sps:$4 sm:$0xff]  }
 0x3ea   : > { %2689 = vmatprep.mubr.bf16.mxu1 %v1225_v46  ;;  %2649 = vmatmul.mubr.bf16.vlgmr.msra.gmra.mxu0 %v1226_v52  ;;  %v4071_v60 = vrot.slane %v1246_v55, %v4025_v40  ;;  %v3578_v46 = vld [vmem:[#allocation3 + $0x2a0] ss:$8 sps:$4 sm:$0xff]   ;;  %v3592_v52 = vld [vmem:[#allocation3 + $0x284] ss:$8 sps:$4 sm:$0xff]  }
 0x3eb   : > { %2699 = vmatpush1.bf16.msra.mxu0 %v3503_v50  ;;  %2659 = vmatprep.subr.bf16.mxu1 %v3508_v51  ;;  %v3589_v50 = vld [vmem:[#allocation3 + $0x394] ss:$8 sps:$4 sm:$0xff]   ;;  %v3584_v51 = vld [vmem:[#allocation3 + $0x290] ss:$8 sps:$4 sm:$0xff]   ;;  %v3595_v55 = vld [vmem:[#allocation3 + $0x384] ss:$8 sps:$4 sm:$0xff]  }
 0x3ec   : > { %2730 = vmatprep.mubr.bf16.mxu0 %v1229_v58  ;;  %2700 = vmatprep.subr.bf16.mxu0 %v3511_v53  ;;  %v3587_v53 = vld [vmem:[#allocation3 + $0x390] ss:$8 sps:$4 sm:$0xff]   ;;  %v1245_v58 = vcombine.high %v4060_v47, %v4060_v47  ;;  %v3607_v47 = vld [vmem:[#allocation3 + $0x564] ss:$8 sps:$4 sm:$0xff]  }
 0x3ed   : > { %2660 = vmatpush1.bf16.msra.mxu1 %v3506_v57  ;;  %v3590_v57 = vld [vmem:[#allocation3 + $0x280] ss:$8 sps:$4 sm:$0xff]  }
 0x3ee   : > { %2661 = vmatprep.subr.bf16.mxu1 %v3514_v59  ;;  %v3598_v59 = vld [vmem:[#allocation3 + $0x474] ss:$8 sps:$4 sm:$0xff]  }
 0x3ef   : > { %2701 = vmatpush1.bf16.msra.mxu0 %v3509_v61  ;;  %v3593_v61 = vld [vmem:[#allocation3 + $0x380] ss:$8 sps:$4 sm:$0xff]  }
 0x3f0   : > { %2702 = vmatprep.subr.bf16.mxu0 %v3517_v62  ;;  %v3601_v62 = vld [vmem:[#allocation3 + $0x574] ss:$8 sps:$4 sm:$0xff]  }
 0x3f1   : > { %2662 = vmatpush1.bf16.msra.mxu1 %v3512_v63  ;;  %v3596_v63 = vld [vmem:[#allocation3 + $0x470] ss:$8 sps:$4 sm:$0xff]  }
 0x3f2   : > { %2663 = vmatprep.subr.bf16.mxu1 %v3520_v0  ;;  %v1267_v0 = vrot.slane %v1245_v58, %v4025_v40  ;;  %v3605_v40 = vld [vmem:[#allocation3 + $0x560] ss:$8 sps:$4 sm:$0xff]   ;;  %v3682_v58 = vld [vmem:[#allocation3 + $0x494] ss:$8 sps:$4 sm:$0xff]  }
 0x3f3   : > { %2703 = vmatpush1.bf16.msra.mxu0 %v3515_v1  ;;  %v3604_v1 = vld [vmem:[#allocation3 + $0x464] ss:$8 sps:$4 sm:$0xff]  }
 0x3f4   : > { %2704 = vmatprep.subr.bf16.mxu0 %v3523_v2  ;;  %v3599_v2 = vld [vmem:[#allocation3 + $0x570] ss:$8 sps:$4 sm:$0xff]  }
 0x3f5   : > { %2664 = vmatpush1.bf16.msra.mxu1 %v3518_v3  ;;  %v1227_v3 = vcombine.high %v4054_v39, %v4054_v39 }
 0x3f6   : > { %2665 = vmatprep.subr.bf16.mxu1 %v3526_v4  ;;  %v1277_v4 = vcombine.high %v1267_v0, %v1267_v0 }
 0x3f7   : > { %2705 = vmatpush1.bf16.msra.mxu0 %v3521_v5  ;;  %v3602_v5 = vld [vmem:[#allocation3 + $0x460] ss:$8 sps:$4 sm:$0xff]  }
 0x3f8   : > { %2706 = vmatprep.subr.bf16.mxu0 %v3529_v6  ;;  %v3610_v6 = vld [vmem:[#allocation3 + $0x454] ss:$8 sps:$4 sm:$0xff]  }
 0x3f9   : > { %2666 = vmatpush1.bf16.msra.mxu1 %v3524_v7  ;;  %v3613_v7 = vld [vmem:[#allocation3 + $0x554] ss:$8 sps:$4 sm:$0xff]  }
 0x3fa   : > { %2667 = vmatprep.subr.bf16.mxu1 %v3532_v8  ;;  %v3608_v8 = vld [vmem:[#allocation3 + $0x450] ss:$8 sps:$4 sm:$0xff]  }
 0x3fb   : > { %2707 = vmatpush1.bf16.msra.mxu0 %v3527_v9  ;;  %v3616_v9 = vld [vmem:[#allocation3 + $0x444] ss:$8 sps:$4 sm:$0xff]  }
 0x3fc   : > { %2708 = vmatprep.subr.bf16.mxu0 %v3535_v10  ;;  %v3619_v10 = vld [vmem:[#allocation3 + $0x544] ss:$8 sps:$4 sm:$0xff]  }
 0x3fd   : > { %2668 = vmatpush1.bf16.msra.mxu1 %v3530_v11  ;;  %v3614_v11 = vld [vmem:[#allocation3 + $0x440] ss:$8 sps:$4 sm:$0xff]  }
 0x3fe   : > { %2669 = vmatprep.subr.bf16.mxu1 %v3538_v12  ;;  %v3622_v12 = vld [vmem:[#allocation3 + $0x434] ss:$8 sps:$4 sm:$0xff]  }
 0x3ff   : > { %2709 = vmatpush1.bf16.msra.mxu0 %v3533_v13  ;;  %v3617_v13 = vld [vmem:[#allocation3 + $0x540] ss:$8 sps:$4 sm:$0xff]  }
 0x400   : > { %2710 = vmatprep.subr.bf16.mxu0 %v3541_v14  ;;  %v3625_v14 = vld [vmem:[#allocation3 + $0x534] ss:$8 sps:$4 sm:$0xff]  }
 0x401   : > { %2670 = vmatpush1.bf16.msra.mxu1 %v3536_v15  ;;  %v3620_v15 = vld [vmem:[#allocation3 + $0x430] ss:$8 sps:$4 sm:$0xff]  }
 0x402   : > { %2671 = vmatprep.subr.bf16.mxu1 %v3544_v16  ;;  %v3628_v16 = vld [vmem:[#allocation3 + $0x424] ss:$8 sps:$4 sm:$0xff]  }
 0x403   : > { %2711 = vmatpush1.bf16.msra.mxu0 %v3539_v17  ;;  %v3623_v17 = vld [vmem:[#allocation3 + $0x530] ss:$8 sps:$4 sm:$0xff]  }
 0x404   : > { %2712 = vmatprep.subr.bf16.mxu0 %v3547_v18  ;;  %v3631_v18 = vld [vmem:[#allocation3 + $0x524] ss:$8 sps:$4 sm:$0xff]  }
 0x405   : > { %2672 = vmatpush1.bf16.msra.mxu1 %v3542_v19  ;;  %v3626_v19 = vld [vmem:[#allocation3 + $0x420] ss:$8 sps:$4 sm:$0xff]  }
 0x406   : > { %2673 = vmatprep.subr.bf16.mxu1 %v3550_v20  ;;  %v3634_v20 = vld [vmem:[#allocation3 + $0x414] ss:$8 sps:$4 sm:$0xff]  }
 0x407   : > { %2713 = vmatpush1.bf16.msra.mxu0 %v3545_v21  ;;  %v3629_v21 = vld [vmem:[#allocation3 + $0x520] ss:$8 sps:$4 sm:$0xff]  }
 0x408   : > { %2714 = vmatprep.subr.bf16.mxu0 %v3553_v22  ;;  %v3637_v22 = vld [vmem:[#allocation3 + $0x514] ss:$8 sps:$4 sm:$0xff]  }
 0x409   : > { %2674 = vmatpush2.bf16.msra.mxu1 %v3548_v23  ;;  %v3632_v23 = vld [vmem:[#allocation3 + $0x410] ss:$8 sps:$4 sm:$0xff]  }
 0x40a   : > { %2675 = vmatprep.subr.bf16.mxu1 %v3556_v24  ;;  %v3640_v24 = vld [vmem:[#allocation3 + $0x404] ss:$8 sps:$4 sm:$0xff]  }
 0x40b   : > { %2715 = vmatpush2.bf16.msra.mxu0 %v3551_v25  ;;  %v3635_v25 = vld [vmem:[#allocation3 + $0x510] ss:$8 sps:$4 sm:$0xff]  }
 0x40c   : > { %2716 = vmatprep.subr.bf16.mxu0 %v3559_v26  ;;  %v3643_v26 = vld [vmem:[#allocation3 + $0x504] ss:$8 sps:$4 sm:$0xff]  }
 0x40d   : > { %2676 = vmatpush2.bf16.msra.mxu1 %v3554_v27  ;;  %v3638_v27 = vld [vmem:[#allocation3 + $0x400] ss:$8 sps:$4 sm:$0xff]  }
 0x40e   : > { %2677 = vmatprep.subr.bf16.mxu1 %v3562_v28  ;;  %v3646_v28 = vld [vmem:[#allocation3 + $0x4f4] ss:$8 sps:$4 sm:$0xff]  }
 0x40f   : > { %2717 = vmatpush2.bf16.msra.mxu0 %v3557_v29  ;;  %v3641_v29 = vld [vmem:[#allocation3 + $0x500] ss:$8 sps:$4 sm:$0xff]  }
 0x410   : > { %2718 = vmatprep.subr.bf16.mxu0 %v3565_v30  ;;  %v3649_v30 = vld [vmem:[#allocation3 + $0x5f4] ss:$8 sps:$4 sm:$0xff]  }
 0x411   : > { %2678 = vmatpush2.bf16.msra.mxu1 %v3560_v32  ;;  %v3644_v32 = vld [vmem:[#allocation3 + $0x4f0] ss:$8 sps:$4 sm:$0xff]  }
 0x412   : > { %2679 = vmatprep.subr.bf16.mxu1 %v3568_v33  ;;  %v3652_v33 = vld [vmem:[#allocation3 + $0x4e4] ss:$8 sps:$4 sm:$0xff]  }
 0x413   : > { %2719 = vmatpush2.bf16.msra.mxu0 %v3563_v34  ;;  %v3647_v34 = vld [vmem:[#allocation3 + $0x5f0] ss:$8 sps:$4 sm:$0xff]  }
 0x414   : > { %2720 = vmatprep.subr.bf16.mxu0 %v3571_v35  ;;  %v3655_v35 = vld [vmem:[#allocation3 + $0x5e4] ss:$8 sps:$4 sm:$0xff]  }
 0x415   : > { %2680 = vmatpush2.bf16.msra.mxu1 %v3566_v36  ;;  %v3650_v36 = vld [vmem:[#allocation3 + $0x4e0] ss:$8 sps:$4 sm:$0xff]  }
 0x416   : > { %2681 = vmatprep.subr.bf16.mxu1 %v3574_v37  ;;  %v3658_v37 = vld [vmem:[#allocation3 + $0x4d4] ss:$8 sps:$4 sm:$0xff]  }
 0x417   : > { %2721 = vmatpush2.bf16.msra.mxu0 %v3569_v38  ;;  %v3653_v38 = vld [vmem:[#allocation3 + $0x5e0] ss:$8 sps:$4 sm:$0xff]  }
 0x418   : > { %2722 = vmatprep.subr.bf16.mxu0 %v3577_v41  ;;  %v3661_v41 = vld [vmem:[#allocation3 + $0x5d4] ss:$8 sps:$4 sm:$0xff]  }
 0x419   : > { %2682 = vmatpush2.bf16.msra.mxu1 %v3572_v42  ;;  %v3656_v42 = vld [vmem:[#allocation3 + $0x4d0] ss:$8 sps:$4 sm:$0xff]  }
 0x41a   : > { %2683 = vmatprep.subr.bf16.mxu1 %v3580_v43  ;;  %v3664_v43 = vld [vmem:[#allocation3 + $0x4c4] ss:$8 sps:$4 sm:$0xff]  }
 0x41b   : > { %2723 = vmatpush2.bf16.msra.mxu0 %v3575_v44  ;;  %v3659_v44 = vld [vmem:[#allocation3 + $0x5d0] ss:$8 sps:$4 sm:$0xff]  }
 0x41c   : > { %2724 = vmatprep.subr.bf16.mxu0 %v3583_v45  ;;  %v3667_v45 = vld [vmem:[#allocation3 + $0x5c4] ss:$8 sps:$4 sm:$0xff]  }
 0x41d   : > { %2684 = vmatpush2.bf16.msra.mxu1 %v3578_v46  ;;  %v3662_v46 = vld [vmem:[#allocation3 + $0x4c0] ss:$8 sps:$4 sm:$0xff]  }
 0x41e   : > { %2685 = vmatprep.subr.bf16.mxu1 %v3586_v48  ;;  %v3670_v48 = vld [vmem:[#allocation3 + $0x4b4] ss:$8 sps:$4 sm:$0xff]  }
 0x41f   : > { %2725 = vmatpush2.bf16.msra.mxu0 %v3581_v49  ;;  %v3665_v49 = vld [vmem:[#allocation3 + $0x5c0] ss:$8 sps:$4 sm:$0xff]  }
 0x420   : > { %2726 = vmatprep.subr.bf16.mxu0 %v3589_v50  ;;  %v3673_v50 = vld [vmem:[#allocation3 + $0x5b4] ss:$8 sps:$4 sm:$0xff]  }
 0x421   : > { %2686 = vmatpush2.bf16.msra.mxu1 %v3584_v51  ;;  %v3668_v51 = vld [vmem:[#allocation3 + $0x4b0] ss:$8 sps:$4 sm:$0xff]  }
 0x422   : > { %2687 = vmatprep.subr.bf16.mxu1 %v3592_v52  ;;  %v3676_v52 = vld [vmem:[#allocation3 + $0x4a4] ss:$8 sps:$4 sm:$0xff]  }
 0x423   : > { %2727 = vmatpush2.bf16.msra.mxu0 %v3587_v53  ;;  %v3671_v53 = vld [vmem:[#allocation3 + $0x5b0] ss:$8 sps:$4 sm:$0xff]  }
 0x424   : > { %2728 = vmatprep.subr.bf16.mxu0 %v3595_v55  ;;  %v3679_v55 = vld [vmem:[#allocation3 + $0x5a4] ss:$8 sps:$4 sm:$0xff]  }
 0x425   : > { %2688 = vmatpush2.bf16.msra.mxu1 %v3590_v57  ;;  %v3674_v57 = vld [vmem:[#allocation3 + $0x4a0] ss:$8 sps:$4 sm:$0xff]  }
 0x426   : > { %2739 = vmatprep.subr.bf16.mxu1 %v3598_v59  ;;  %v3677_v59 = vld [vmem:[#allocation3 + $0x5a0] ss:$8 sps:$4 sm:$0xff]  }
 0x427   : > { %2729 = vmatpush2.bf16.msra.mxu0 %v3593_v61  ;;  %v3685_v61 = vld [vmem:[#allocation3 + $0x594] ss:$8 sps:$4 sm:$0xff]  }
 0x428   : > { %2690 = vmatmul.mubr.bf16.vlgmr.msra.gmra.mxu1 %v4054_v39  ;;  %2780 = vmatprep.subr.bf16.mxu0 %v3601_v62  ;;  %v3611_v39 = vld [vmem:[#allocation3 + $0x550] ss:$8 sps:$4 sm:$0xff]  }
 0x429   : > { %2740 = vmatpush1.bf16.msra.mxu1 %v3596_v63  ;;  %2771 = vmatprep.mubr.bf16.mxu1 %v1267_v0  ;;  %v3680_v62 = vld [vmem:[#allocation3 + $0x490] ss:$8 sps:$4 sm:$0xff]   ;;  %v3688_v63 = vld [vmem:[#allocation3 + $0x484] ss:$8 sps:$4 sm:$0xff]  }
 0x42a   : > { %2731 = vmatmul.mubr.bf16.vlgmr.msra.gmra.mxu0 %v1227_v3  ;;  %2741 = vmatprep.subr.bf16.mxu1 %v3604_v1  ;;  %v3683_v0 = vld [vmem:[#allocation3 + $0x590] ss:$8 sps:$4 sm:$0xff]   ;;  %v3691_v1 = vld [vmem:[#allocation3 + $0x584] ss:$8 sps:$4 sm:$0xff]   ;;  %v3694_v3 = vld [vmem:[#allocation3 + $0x674] ss:$8 sps:$4 sm:$0xff]  }
 0x42b   : > { %2781 = vmatpush1.bf16.msra.mxu0 %v3599_v2  ;;  %2812 = vmatprep.mubr.bf16.mxu0 %v1277_v4  ;;  %v3686_v2 = vld [vmem:[#allocation3 + $0x480] ss:$8 sps:$4 sm:$0xff]   ;;  %v3697_v4 = vld [vmem:[#allocation3 + $0x774] ss:$8 sps:$4 sm:$0xff]  }
 0x42c   : > { %2782 = vmatprep.subr.bf16.mxu0 %v3607_v47  ;;  %v3689_v47 = vld [vmem:[#allocation3 + $0x580] ss:$8 sps:$4 sm:$0xff]  }
 0x42d   : > { %2742 = vmatpush1.bf16.msra.mxu1 %v3602_v5  ;;  %v3692_v5 = vld [vmem:[#allocation3 + $0x670] ss:$8 sps:$4 sm:$0xff]  }
 0x42e   : > { %2743 = vmatprep.subr.bf16.mxu1 %v3610_v6  ;;  %v3700_v6 = vld [vmem:[#allocation3 + $0x664] ss:$8 sps:$4 sm:$0xff]  }
 0x42f   : > { %2783 = vmatpush1.bf16.msra.mxu0 %v3605_v40  ;;  %v3695_v40 = vld [vmem:[#allocation3 + $0x770] ss:$8 sps:$4 sm:$0xff]  }
 0x430   : > { %2784 = vmatprep.subr.bf16.mxu0 %v3613_v7  ;;  %v1275_v7 = vcombine.high %v4065_v54, %v4065_v54 }
 0x431   : > { %2744 = vmatpush1.bf16.msra.mxu1 %v3608_v8  ;;  %v3703_v8 = vld [vmem:[#allocation3 + $0x764] ss:$8 sps:$4 sm:$0xff]  }
 0x432   : > { %2745 = vmatprep.subr.bf16.mxu1 %v3616_v9  ;;  %v1278_v9 = vcombine.high %v4071_v60, %v4071_v60 }
 0x433   : > { %2785 = vmatpush1.bf16.msra.mxu0 %v3611_v39  ;;  %v3698_v39 = vld [vmem:[#allocation3 + $0x660] ss:$8 sps:$4 sm:$0xff]  }
 0x434   : > { %2786 = vmatprep.subr.bf16.mxu0 %v3619_v10  ;;  %v3706_v10 = vld [vmem:[#allocation3 + $0x654] ss:$8 sps:$4 sm:$0xff]  }
 0x435   : > { %2746 = vmatpush1.bf16.msra.mxu1 %v3614_v11  ;;  %v3701_v11 = vld [vmem:[#allocation3 + $0x760] ss:$8 sps:$4 sm:$0xff]  }
 0x436   : > { %2747 = vmatprep.subr.bf16.mxu1 %v3622_v12  ;;  %v3709_v12 = vld [vmem:[#allocation3 + $0x754] ss:$8 sps:$4 sm:$0xff]  }
 0x437   : > { %2787 = vmatpush1.bf16.msra.mxu0 %v3617_v13  ;;  %v3704_v13 = vld [vmem:[#allocation3 + $0x650] ss:$8 sps:$4 sm:$0xff]  }
 0x438   : > { %2788 = vmatprep.subr.bf16.mxu0 %v3625_v14  ;;  %v3707_v14 = vld [vmem:[#allocation3 + $0x750] ss:$8 sps:$4 sm:$0xff]  }
 0x439   : > { %2748 = vmatpush1.bf16.msra.mxu1 %v3620_v15  ;;  %v3715_v15 = vld [vmem:[#allocation3 + $0x744] ss:$8 sps:$4 sm:$0xff]  }
 0x43a   : > { %2749 = vmatprep.subr.bf16.mxu1 %v3628_v16  ;;  %v3710_v16 = vld [vmem:[#allocation3 + $0x640] ss:$8 sps:$4 sm:$0xff]  }
 0x43b   : > { %2789 = vmatpush1.bf16.msra.mxu0 %v3623_v17  ;;  %v3713_v17 = vld [vmem:[#allocation3 + $0x740] ss:$8 sps:$4 sm:$0xff]  }
 0x43c   : > { %2790 = vmatprep.subr.bf16.mxu0 %v3631_v18  ;;  %v3721_v18 = vld [vmem:[#allocation3 + $0x734] ss:$8 sps:$4 sm:$0xff]  }
 0x43d   : > { %2750 = vmatpush1.bf16.msra.mxu1 %v3626_v19  ;;  %v3716_v19 = vld [vmem:[#allocation3 + $0x630] ss:$8 sps:$4 sm:$0xff]  }
 0x43e   : > { %2751 = vmatprep.subr.bf16.mxu1 %v3634_v20  ;;  %v3724_v20 = vld [vmem:[#allocation3 + $0x624] ss:$8 sps:$4 sm:$0xff]  }
 0x43f   : > { %2791 = vmatpush1.bf16.msra.mxu0 %v3629_v21  ;;  %v3719_v21 = vld [vmem:[#allocation3 + $0x730] ss:$8 sps:$4 sm:$0xff]  }
 0x440   : > { %2792 = vmatprep.subr.bf16.mxu0 %v3637_v22  ;;  %v3727_v22 = vld [vmem:[#allocation3 + $0x724] ss:$8 sps:$4 sm:$0xff]  }
 0x441   : > { %2752 = vmatpush1.bf16.msra.mxu1 %v3632_v23  ;;  %v3722_v23 = vld [vmem:[#allocation3 + $0x620] ss:$8 sps:$4 sm:$0xff]  }
 0x442   : > { %2753 = vmatprep.subr.bf16.mxu1 %v3640_v24  ;;  %v3730_v24 = vld [vmem:[#allocation3 + $0x614] ss:$8 sps:$4 sm:$0xff]  }
 0x443   : > { %2793 = vmatpush1.bf16.msra.mxu0 %v3635_v25  ;;  %v3725_v25 = vld [vmem:[#allocation3 + $0x720] ss:$8 sps:$4 sm:$0xff]  }
 0x444   : > { %2794 = vmatprep.subr.bf16.mxu0 %v3643_v26  ;;  %v3733_v26 = vld [vmem:[#allocation3 + $0x714] ss:$8 sps:$4 sm:$0xff]  }
 0x445   : > { %2754 = vmatpush1.bf16.msra.mxu1 %v3638_v27  ;;  %v3728_v27 = vld [vmem:[#allocation3 + $0x610] ss:$8 sps:$4 sm:$0xff]  }
 0x446   : > { %2755 = vmatprep.subr.bf16.mxu1 %v3646_v28  ;;  %v3736_v28 = vld [vmem:[#allocation3 + $0x604] ss:$8 sps:$4 sm:$0xff]  }
 0x447   : > { %2795 = vmatpush1.bf16.msra.mxu0 %v3641_v29  ;;  %v3731_v29 = vld [vmem:[#allocation3 + $0x710] ss:$8 sps:$4 sm:$0xff]  }
 0x448   : > { %2796 = vmatprep.subr.bf16.mxu0 %v3649_v30  ;;  %v3739_v30 = vld [vmem:[#allocation3 + $0x704] ss:$8 sps:$4 sm:$0xff]  }
 0x449   : > { %2756 = vmatpush2.bf16.msra.mxu1 %v3644_v32  ;;  %v3734_v32 = vld [vmem:[#allocation3 + $0x600] ss:$8 sps:$4 sm:$0xff]  }
 0x44a   : > { %2757 = vmatprep.subr.bf16.mxu1 %v3652_v33  ;;  %v3742_v33 = vld [vmem:[#allocation3 + $0x6f4] ss:$8 sps:$4 sm:$0xff]  }
 0x44b   : > { %2797 = vmatpush2.bf16.msra.mxu0 %v3647_v34  ;;  %v3737_v34 = vld [vmem:[#allocation3 + $0x700] ss:$8 sps:$4 sm:$0xff]  }
 0x44c   : > { %2798 = vmatprep.subr.bf16.mxu0 %v3655_v35  ;;  %v3745_v35 = vld [vmem:[#allocation3 + $0x7f4] ss:$8 sps:$4 sm:$0xff]  }
 0x44d   : > { %2758 = vmatpush2.bf16.msra.mxu1 %v3650_v36  ;;  %v3740_v36 = vld [vmem:[#allocation3 + $0x6f0] ss:$8 sps:$4 sm:$0xff]  }
 0x44e   : > { %2759 = vmatprep.subr.bf16.mxu1 %v3658_v37  ;;  %v3748_v37 = vld [vmem:[#allocation3 + $0x6e4] ss:$8 sps:$4 sm:$0xff]  }
 0x44f   : > { %2799 = vmatpush2.bf16.msra.mxu0 %v3653_v38  ;;  %v3743_v38 = vld [vmem:[#allocation3 + $0x7f0] ss:$8 sps:$4 sm:$0xff]  }
 0x450   : > { %2800 = vmatprep.subr.bf16.mxu0 %v3661_v41  ;;  %v3751_v41 = vld [vmem:[#allocation3 + $0x7e4] ss:$8 sps:$4 sm:$0xff]  }
 0x451   : > { %2760 = vmatpush2.bf16.msra.mxu1 %v3656_v42  ;;  %v3746_v42 = vld [vmem:[#allocation3 + $0x6e0] ss:$8 sps:$4 sm:$0xff]  }
 0x452   : > { %2761 = vmatprep.subr.bf16.mxu1 %v3664_v43  ;;  %v3754_v43 = vld [vmem:[#allocation3 + $0x6d4] ss:$8 sps:$4 sm:$0xff]  }
 0x453   : > { %2801 = vmatpush2.bf16.msra.mxu0 %v3659_v44  ;;  %v3749_v44 = vld [vmem:[#allocation3 + $0x7e0] ss:$8 sps:$4 sm:$0xff]  }
 0x454   : > { %2802 = vmatprep.subr.bf16.mxu0 %v3667_v45  ;;  %v3757_v45 = vld [vmem:[#allocation3 + $0x7d4] ss:$8 sps:$4 sm:$0xff]  }
 0x455   : > { %2762 = vmatpush2.bf16.msra.mxu1 %v3662_v46  ;;  %v3752_v46 = vld [vmem:[#allocation3 + $0x6d0] ss:$8 sps:$4 sm:$0xff]  }
 0x456   : > { %2763 = vmatprep.subr.bf16.mxu1 %v3670_v48  ;;  %v3760_v48 = vld [vmem:[#allocation3 + $0x6c4] ss:$8 sps:$4 sm:$0xff]  }
 0x457   : > { %2803 = vmatpush2.bf16.msra.mxu0 %v3665_v49  ;;  %v3755_v49 = vld [vmem:[#allocation3 + $0x7d0] ss:$8 sps:$4 sm:$0xff]  }
 0x458   : > { %2804 = vmatprep.subr.bf16.mxu0 %v3673_v50  ;;  %v3763_v50 = vld [vmem:[#allocation3 + $0x7c4] ss:$8 sps:$4 sm:$0xff]  }
 0x459   : > { %2764 = vmatpush2.bf16.msra.mxu1 %v3668_v51  ;;  %v3758_v51 = vld [vmem:[#allocation3 + $0x6c0] ss:$8 sps:$4 sm:$0xff]  }
 0x45a   : > { %2765 = vmatprep.subr.bf16.mxu1 %v3676_v52  ;;  %v3766_v52 = vld [vmem:[#allocation3 + $0x6b4] ss:$8 sps:$4 sm:$0xff]  }
 0x45b   : > { %2805 = vmatpush2.bf16.msra.mxu0 %v3671_v53  ;;  %v3761_v53 = vld [vmem:[#allocation3 + $0x7c0] ss:$8 sps:$4 sm:$0xff]  }
 0x45c   : > { %2806 = vmatprep.subr.bf16.mxu0 %v3679_v55  ;;  %v3769_v55 = vld [vmem:[#allocation3 + $0x7b4] ss:$8 sps:$4 sm:$0xff]  }
 0x45d   : > { %2766 = vmatpush2.bf16.msra.mxu1 %v3674_v57  ;;  %v3764_v57 = vld [vmem:[#allocation3 + $0x6b0] ss:$8 sps:$4 sm:$0xff]  }
 0x45e   : > { %2767 = vmatprep.subr.bf16.mxu1 %v3682_v58  ;;  %v3772_v58 = vld [vmem:[#allocation3 + $0x6a4] ss:$8 sps:$4 sm:$0xff]  }
 0x45f   : > { %2807 = vmatpush2.bf16.msra.mxu0 %v3677_v59  ;;  %v3767_v59 = vld [vmem:[#allocation3 + $0x7b0] ss:$8 sps:$4 sm:$0xff]  }
 0x460   : > { %2808 = vmatprep.subr.bf16.mxu0 %v3685_v61  ;;  %v3775_v61 = vld [vmem:[#allocation3 + $0x7a4] ss:$8 sps:$4 sm:$0xff]  }
 0x461   : > { %2768 = vmatpush2.bf16.msra.mxu1 %v3680_v62  ;;  %v3770_v62 = vld [vmem:[#allocation3 + $0x6a0] ss:$8 sps:$4 sm:$0xff]  }
 0x462   : > { %2769 = vmatprep.subr.bf16.mxu1 %v3688_v63  ;;  %v3778_v63 = vld [vmem:[#allocation3 + $0x694] ss:$8 sps:$4 sm:$0xff]  }
 0x463   : > { %2809 = vmatpush2.bf16.msra.mxu0 %v3683_v0  ;;  %v3773_v0 = vld [vmem:[#allocation3 + $0x7a0] ss:$8 sps:$4 sm:$0xff]  }
 0x464   : > { %2810 = vmatprep.subr.bf16.mxu0 %v3691_v1  ;;  %v3781_v1 = vld [vmem:[#allocation3 + $0x794] ss:$8 sps:$4 sm:$0xff]  }
 0x465   : > { %2770 = vmatpush2.bf16.msra.mxu1 %v3686_v2  ;;  %v3776_v2 = vld [vmem:[#allocation3 + $0x690] ss:$8 sps:$4 sm:$0xff]  }
 0x466   : > { %2821 = vmatprep.subr.bf16.mxu1 %v3694_v3  ;;  %v3784_v3 = vld [vmem:[#allocation3 + $0x684] ss:$8 sps:$4 sm:$0xff]  }
 0x467   : > { %2811 = vmatpush2.bf16.msra.mxu0 %v3689_v47  ;;  %v3779_v47 = vld [vmem:[#allocation3 + $0x790] ss:$8 sps:$4 sm:$0xff]  }
 0x468   : > { %2772 = vmatmul.mubr.bf16.vlgmr.msra.gmra.mxu1 %v4065_v54  ;;  %2862 = vmatprep.subr.bf16.mxu0 %v3697_v4  ;;  %v3712_v54 = vld [vmem:[#allocation3 + $0x644] ss:$8 sps:$4 sm:$0xff]  }
 0x469   : > { %2822 = vmatpush1.bf16.msra.mxu1 %v3692_v5  ;;  %2853 = vmatprep.mubr.bf16.mxu1 %v4071_v60  ;;  %v3718_v60 = vld [vmem:[#allocation3 + $0x634] ss:$8 sps:$4 sm:$0xff]   ;;  %v3787_v4 = vld [vmem:[#allocation3 + $0x784] ss:$8 sps:$4 sm:$0xff]   ;;  %v3782_v5 = vld [vmem:[#allocation3 + $0x680] ss:$8 sps:$4 sm:$0xff]  }
 0x46a   : > { %2813 = vmatmul.mubr.bf16.vlgmr.msra.gmra.mxu0 %v1275_v7  ;;  %2823 = vmatprep.subr.bf16.mxu1 %v3700_v6  ;;  %v1171_v6 = vsub.s32 0, %v3980_v31  ;;  %v3785_v7 = vld [vmem:[#allocation3 + $0x780] ss:$8 sps:$4 sm:$0xff]  }
 0x46b   : > { %2863 = vmatpush1.bf16.msra.mxu0 %v3695_v40  ;;  %2894 = vmatprep.mubr.bf16.mxu0 %v1278_v9  ;;  %v1167_v40 = vld [vmem:[%s4110_s4] sm:$0x3] }
 0x46c   : > { %2864 = vmatprep.subr.bf16.mxu0 %v3703_v8  ;;  %v1175_v8 = vsub.s32 1, %v3980_v31  ;;  %v1172_v9 = vrot.slane %v1167_v40, %v1171_v6 }
 0x46d   : > { %2824 = vmatpush1.bf16.msra.mxu1 %v3698_v39 }
 0x46e   : > { %2825 = vmatprep.subr.bf16.mxu1 %v3706_v10  ;;  %v1176_v39 = vrot.slane %v1167_v40, %v1175_v8 }
 0x46f   : > { %2865 = vmatpush1.bf16.msra.mxu0 %v3701_v11  ;;  %v1276_v11 = vcombine.high %v4068_v56, %v4068_v56 }
 0x470   : > { %2866 = vmatprep.subr.bf16.mxu0 %v3709_v12 }
 0x471   : > { %2826 = vmatpush1.bf16.msra.mxu1 %v3704_v13 }
 0x472   : > { %2827 = vmatprep.subr.bf16.mxu1 %v3712_v54 }
 0x473   : > { %2867 = vmatpush1.bf16.msra.mxu0 %v3707_v14 }
 0x474   : > { %2868 = vmatprep.subr.bf16.mxu0 %v3715_v15 }
 0x475   : > { %2828 = vmatpush1.bf16.msra.mxu1 %v3710_v16 }
 0x476   : > { %2829 = vmatprep.subr.bf16.mxu1 %v3718_v60 }
 0x477   : > { %2869 = vmatpush1.bf16.msra.mxu0 %v3713_v17 }
 0x478   : > { %2870 = vmatprep.subr.bf16.mxu0 %v3721_v18 }
 0x479   : > { %2830 = vmatpush1.bf16.msra.mxu1 %v3716_v19 }
 0x47a   : > { %2831 = vmatprep.subr.bf16.mxu1 %v3724_v20 }
 0x47b   : > { %2871 = vmatpush1.bf16.msra.mxu0 %v3719_v21 }
 0x47c   : > { %2872 = vmatprep.subr.bf16.mxu0 %v3727_v22 }
 0x47d   : > { %2832 = vmatpush1.bf16.msra.mxu1 %v3722_v23 }
 0x47e   : > { %2833 = vmatprep.subr.bf16.mxu1 %v3730_v24 }
 0x47f   : > { %2873 = vmatpush1.bf16.msra.mxu0 %v3725_v25 }
 0x480   : > { %2874 = vmatprep.subr.bf16.mxu0 %v3733_v26 }
 0x481   : > { %2834 = vmatpush1.bf16.msra.mxu1 %v3728_v27 }
 0x482   : > { %2835 = vmatprep.subr.bf16.mxu1 %v3736_v28 }
 0x483   : > { %2875 = vmatpush1.bf16.msra.mxu0 %v3731_v29 }
 0x484   : > { %2876 = vmatprep.subr.bf16.mxu0 %v3739_v30 }
 0x485   : > { %2836 = vmatpush1.bf16.msra.mxu1 %v3734_v32 }
 0x486   : > { %2837 = vmatprep.subr.bf16.mxu1 %v3742_v33 }
 0x487   : > { %2877 = vmatpush1.bf16.msra.mxu0 %v3737_v34 }
 0x488   : > { %2878 = vmatprep.subr.bf16.mxu0 %v3745_v35 }
 0x489   : > { %2838 = vmatpush2.bf16.msra.mxu1 %v3740_v36 }
 0x48a   : > { %2839 = vmatprep.subr.bf16.mxu1 %v3748_v37 }
 0x48b   : > { %2879 = vmatpush2.bf16.msra.mxu0 %v3743_v38 }
 0x48c   : > { %2880 = vmatprep.subr.bf16.mxu0 %v3751_v41 }
 0x48d   : > { %2840 = vmatpush2.bf16.msra.mxu1 %v3746_v42 }
 0x48e   : > { %2841 = vmatprep.subr.bf16.mxu1 %v3754_v43 }
 0x48f   : > { %2881 = vmatpush2.bf16.msra.mxu0 %v3749_v44 }
 0x490   : > { %2882 = vmatprep.subr.bf16.mxu0 %v3757_v45 }
 0x491   : > { %2842 = vmatpush2.bf16.msra.mxu1 %v3752_v46 }
 0x492   : > { %2843 = vmatprep.subr.bf16.mxu1 %v3760_v48 }
 0x493   : > { %2883 = vmatpush2.bf16.msra.mxu0 %v3755_v49 }
 0x494   : > { %2884 = vmatprep.subr.bf16.mxu0 %v3763_v50 }
 0x495   : > { %2844 = vmatpush2.bf16.msra.mxu1 %v3758_v51 }
 0x496   : > { %2845 = vmatprep.subr.bf16.mxu1 %v3766_v52 }
 0x497   : > { %2885 = vmatpush2.bf16.msra.mxu0 %v3761_v53 }
 0x498   : > { %2886 = vmatprep.subr.bf16.mxu0 %v3769_v55 }
 0x499   : > { %2846 = vmatpush2.bf16.msra.mxu1 %v3764_v57 }
 0x49a   : > { %2847 = vmatprep.subr.bf16.mxu1 %v3772_v58 }
 0x49b   : > { %2887 = vmatpush2.bf16.msra.mxu0 %v3767_v59 }
 0x49c   : > { %2888 = vmatprep.subr.bf16.mxu0 %v3775_v61 }
 0x49d   : > { %2848 = vmatpush2.bf16.msra.mxu1 %v3770_v62 }
 0x49e   : > { %2849 = vmatprep.subr.bf16.mxu1 %v3778_v63 }
 0x49f   : > { %2889 = vmatpush2.bf16.msra.mxu0 %v3773_v0 }
 0x4a0   : > { %2890 = vmatprep.subr.bf16.mxu0 %v3781_v1 }
 0x4a1   : > { %2850 = vmatpush2.bf16.msra.mxu1 %v3776_v2 }
 0x4a2   : > { %2851 = vmatprep.subr.bf16.mxu1 %v3784_v3 }
 0x4a3   : > { %2891 = vmatpush2.bf16.msra.mxu0 %v3779_v47 }
 0x4a4   : > { %2892 = vmatprep.subr.bf16.mxu0 %v3787_v4 }
 0x4a5   : > { %2852 = vmatpush2.bf16.msra.mxu1 %v3782_v5 }
 0x4a7   : > { %2893 = vmatpush2.bf16.msra.mxu0 %v3785_v7 }
 0x4a8   : > { %2854 = vmatmul.mubr.bf16.vlgmr.msra.gmra.mxu1 %v4068_v56  ;;  %v2609_v10 = vpop.f32.mrf.mxu1 }
 0x4a9   : > { %v2610_v12 = vadd.f32 %v2609_v10, %v1172_v9 }
 0x4aa   : > { %2895 = vmatmul.mubr.bf16.vlgmr.msra.gmra.mxu0 %v1276_v11  ;;  %v2611_v13 = vpop.f32.mrf.mxu1  ;;  %v2650_v54 = vpop.f32.mrf.mxu0 }
 0x4ab   : > { %v2612_v14 = vadd.f32 %v2611_v13, %v1176_v39  ;;  %v2651_v15 = vadd.f32 %v2650_v54, %v2610_v12 }
 0x4ac   : > { %v2613_v16 = vpop.f32.mrf.mxu1  ;;  %v2652_v60 = vpop.f32.mrf.mxu0 }
 0x4ad   : > { %v2653_v31 = vadd.f32 %v2652_v60, %v2612_v14 }
 0x4ae   : > { %v2614_v17 = vpop.f32.mrf.mxu1  ;;  %v2654_v18 = vpop.f32.mrf.mxu0 }
 0x4b0   : > { %v2655_v19 = vpop.f32.mrf.mxu0 }
 0x4e8   : > { %v2691_v20 = vpop.f32.mrf.mxu1 }
 0x4e9   : > { %v2692_v21 = vadd.f32 %v2691_v20, %v2651_v15 }
 0x4ea   : > { %v2693_v22 = vpop.f32.mrf.mxu1  ;;  %v2732_v23 = vpop.f32.mrf.mxu0 }
 0x4eb   : > { %v2694_v24 = vadd.f32 %v2693_v22, %v2653_v31  ;;  %v2733_v25 = vadd.f32 %v2732_v23, %v2692_v21 }
 0x4ec   : > { %v2695_v26 = vpop.f32.mrf.mxu1  ;;  %v2734_v56 = vpop.f32.mrf.mxu0 }
 0x4ed   : > { %v2735_v27 = vadd.f32 %v2734_v56, %v2694_v24 }
 0x4ee   : > { %v2696_v28 = vpop.f32.mrf.mxu1  ;;  %v2736_v29 = vpop.f32.mrf.mxu0 }
 0x4f0   : > { %v2737_v30 = vpop.f32.mrf.mxu0 }
 0x528   : > { %v2773_v32 = vpop.f32.mrf.mxu1 }
 0x529   : > { %v2774_v42 = vadd.f32 %v2773_v32, %v2733_v25 }
 0x52a   : > { %v2775_v33 = vpop.f32.mrf.mxu1  ;;  %v2814_v34 = vpop.f32.mrf.mxu0 }
 0x52b   : > { %v2776_v43 = vadd.f32 %v2775_v33, %v2735_v27  ;;  %v2815_v44 = vadd.f32 %v2814_v34, %v2774_v42 }
 0x52c   : > { %v2777_v35 = vpop.f32.mrf.mxu1  ;;  %v2816_v36 = vpop.f32.mrf.mxu0 }
 0x52d   : > { %v2817_v46 = vadd.f32 %v2816_v36, %v2776_v43 }
 0x52e   : > { %v2778_v37 = vpop.f32.mrf.mxu1  ;;  %v2818_v38 = vpop.f32.mrf.mxu0 }
 0x530   : > { %v2819_v41 = vpop.f32.mrf.mxu0 }
 0x568   : > { %v2855_v45 = vpop.f32.mrf.mxu1 }
 0x569   : > { %v2856_v48 = vadd.f32 %v2855_v45, %v2815_v44 }
 0x56a   : > { %v2857_v49 = vpop.f32.mrf.mxu1  ;;  %v2896_v50 = vpop.f32.mrf.mxu0 }
 0x56b   : > { %v2858_v51 = vadd.f32 %v2857_v49, %v2817_v46  ;;  %v2897_v55 = vadd.f32 %v2896_v50, %v2856_v48 }
 0x56c   : > { %v2859_v52 = vpop.f32.mrf.mxu1  ;;  %v2898_v53 = vpop.f32.mrf.mxu0 }
 0x56d   : > { %v2899_v57 = vadd.f32 %v2898_v53, %v2858_v51 }
 0x56e   : > { %v2860_v58 = vpop.f32.mrf.mxu1  ;;  %v2900_v59 = vpop.f32.mrf.mxu0 }
 0x56f   : > { %v2905_v61 = vcombine.low %v2897_v55, %v2899_v57 }
 0x570   : > { %v2901_v62 = vpop.f32.mrf.mxu0 }
 0x571   : > { %3309 = vst.sshfl [vmem:[%s289_s29] sm:$0x33 pattern:$0x76325410] %v2905_v61 }
 0x572 PF: > { %s16_s20 = sadd.s32 1, %s3856_s20   ;;  %s4114_s18 = smov %s3852_s19 }
 0x573   : > { %p13_p2 = scmp.ge.s32.totalorder %s16_s20, 4   ;;  %s4115_s19 = smov %s4117_s22 }
 0x575   :  { %15 = sbr.rel (!%p13_p2) target bundleno = 2 (0x2), region = 83 }
 0x57a   :  { %2945 = vsyncpa [#allocation4], 1 }
 0x57b   :  { %2947 = vsyncpa [#allocation4 + $0x1], 1 }

</bundles_post_ra>
